<compile_context>
chip_gen: v5e
topology: v5e:2x2
jax: 0.10.0
libtpu: 0.0.40
codegen_flags: <defaults>
</compile_context>

<pallas_src>
import functools
import math

import jax
import jax.numpy as jnp
import numpy as np
from jax.experimental import pallas as pl
from jax.experimental.pallas import tpu as pltpu

# ----------------------- small synthetic config ------------------------------
FEATURE_VOCAB_SIZE = 64       # config.feature_vocab_size
FEATURE_EMBEDDING_SIZE = 32   # config.feature_embedding_size (d_model)
FEATURE_SEQ_LEN = 8           # config.feature_sequence_length
NUM_HEADS = 4                 # config.feature_num_attention_heads
FFN_DIM = 64                  # config.feature_transformer_feedforward
NUM_LAYERS = 2                # config.feature_num_hidden_layers
LN_EPS = 1e-5                 # config.feature_layer_norm_eps
PAD_IDX = 0                   # padding row is re-initialized by init_weights anyway
# TODO(synk): dropout layers are identity here (feature_dropout_prob treated as 0 / eval mode).

BATCH = 2
OUT_REPEAT = 8                # `sequence_length` argument of forward()

VMEM = pltpu.MemorySpace.VMEM


def _layer_norm(x, w, b, eps):
    mu = jnp.mean(x, axis=-1, keepdims=True)
    var = jnp.mean(jnp.square(x - mu), axis=-1, keepdims=True)
    return (x - mu) * jax.lax.rsqrt(var + eps) * w + b


# ------------------------------ fused kernel ----------------------------------
def fused_forward_kernel(feat_ref,                        # [T, 1] int32 (VMEM)
                         emb_ref,                         # [V, E] f32 (sqrt(E) folded in)
                         pe_ref,                          # [T, E] f32
                         mask_ref,                        # [T, T] f32 block-diag batch mask
                         wqkv_ref, bqkv_ref,              # [L, E, 3E] bf16, [L, 1, 3E] f32
                         wo_ref, bo_ref,                  # [L, E, E] bf16, [L, 1, E] f32
                         w1_ref, b1_ref,                  # [L, E, F] bf16, [L, 1, F] f32
                         w2_ref, b2_ref,                  # [L, F, E] bf16, [L, 1, E] f32
                         ln1w_ref, ln1b_ref, ln2w_ref, ln2b_ref,   # [L, 1, E] f32
                         lnf_w_ref, lnf_b_ref,            # [1, E] f32
                         wmr_ref, bmr_ref,                # [1, E] f32, [1, 1] f32 (mapper∘reducer fold)
                         o_ref,                           # [B, seq_rep, S] f32
                         *, num_layers, num_heads, eps, seq_rep, batch, seq_len):
    T = batch * seq_len
    V, E = emb_ref.shape
    Dh = E // num_heads

    # ---- embedding gather as a one-hot MXU matmul + flat PE add -------------
    tok = feat_ref[...]                                          # [T, 1] int32
    iota_v = jax.lax.broadcasted_iota(jnp.int32, (T, V), 1)      # [T, V]
    onehot = (iota_v == tok).astype(jnp.float32)                 # exact 0/1
    x = jnp.dot(onehot, emb_ref[...],
                preferred_element_type=jnp.float32) + pe_ref[...]  # [T, E] f32

    mask = mask_ref[...]                                         # [T, T] f32

    # ---- TransformerEncoder layers (post-norm, relu, no user masks) ---------
    for l in range(num_layers):
        xb = x.astype(jnp.bfloat16)                              # single cast per layer
        qkv = jnp.dot(xb, wqkv_ref[l],
                      preferred_element_type=jnp.float32) + bqkv_ref[l]   # [T, 3E]
        q = qkv[:, :E]            # already scaled by 1/sqrt(Dh) (folded in wrapper)
        k = qkv[:, E:2 * E]
        v = qkv[:, 2 * E:]

        # per-head 2-D attention with block-diagonal batch mask
        ctx_heads = []
        for h in range(num_heads):
            sl = slice(h * Dh, (h + 1) * Dh)
            q_h, k_h, v_h = q[:, sl], k[:, sl], v[:, sl]         # [T, Dh] f32
            s_h = jax.lax.dot_general(q_h, k_h, (((1,), (1,)), ((), ())),
                                      preferred_element_type=jnp.float32)  # [T, T]
            s_h = s_h + mask
            s_h = s_h - jnp.max(s_h, axis=-1, keepdims=True)
            p_h = jnp.exp(s_h)
            p_h = p_h * pl.reciprocal(jnp.sum(p_h, axis=-1, keepdims=True),
                                      approx=True)
            ctx_heads.append(jnp.dot(p_h, v_h,
                                     preferred_element_type=jnp.float32))  # [T, Dh]
        ctx = jnp.concatenate(ctx_heads, axis=-1)                # [T, E] f32

        attn = jnp.dot(ctx.astype(jnp.bfloat16), wo_ref[l],
                       preferred_element_type=jnp.float32) + bo_ref[l]

        # residual + LayerNorm 1
        x1 = _layer_norm(x + attn, ln1w_ref[l], ln1b_ref[l], eps)

        # feed-forward (relu) + residual + LayerNorm 2
        h1 = jnp.dot(x1.astype(jnp.bfloat16), w1_ref[l],
                     preferred_element_type=jnp.float32) + b1_ref[l]
        h1 = jnp.maximum(h1, 0.0)
        ffn = jnp.dot(h1.astype(jnp.bfloat16), w2_ref[l],
                      preferred_element_type=jnp.float32) + b2_ref[l]
        x = _layer_norm(x1 + ffn, ln2w_ref[l], ln2b_ref[l], eps)

    # ---- final encoder LayerNorm + folded mapper/reducer (one matvec) -------
    xn = _layer_norm(x, lnf_w_ref[...], lnf_b_ref[...], eps)     # [T, E] f32
    red_row = jax.lax.dot_general(wmr_ref[...], xn, (((1,), (1,)), ((), ())),
                                  preferred_element_type=jnp.float32)      # [1, T]
    red_row = red_row + bmr_ref[...]

    # ---- reshape(-1, 1, S) + repeat(1, seq_rep, 1), single store ------------
    out_blocks = [jnp.broadcast_to(red_row[:, b * seq_len:(b + 1) * seq_len],
                                   (seq_rep, seq_len)) for b in range(batch)]
    o_ref[...] = jnp.stack(out_blocks, axis=0)                   # [B, seq_rep, S]


# ------------------------------ wrapper ----------------------------------------
def feature_transformer_forward(kparams, features, sequence_length):
    B, S = features.shape
    T = B * S
    E = FEATURE_EMBEDDING_SIZE

    # features as a [T, 1] int32 VMEM tensor (one-hot gather inside the kernel)
    feat2d = features.reshape(T, 1).astype(jnp.int32)

    # PE addend, flattened: matches reference `x + pe[:B]` (broadcast over S)
    pe_flat = jnp.broadcast_to(kparams['pe'][:B], (B, S, E)).reshape(T, E)

    # block-diagonal batch mask so the per-head [T,T] scores do not mix batches
    row_b = jnp.arange(T, dtype=jnp.int32) // S
    attn_mask = jnp.where(row_b[:, None] == row_b[None, :],
                          0.0, -1e9).astype(jnp.float32)

    args = (feat2d, kparams['emb'], pe_flat, attn_mask,
            kparams['wqkv'], kparams['bqkv'],
            kparams['wo'], kparams['bo'],
            kparams['w1'], kparams['b1'], kparams['w2'], kparams['b2'],
            kparams['ln1w'], kparams['ln1b'], kparams['ln2w'], kparams['ln2b'],
            kparams['lnf_w'], kparams['lnf_b'],
            kparams['w_mr'], kparams['b_mr'])
    in_specs = [pl.BlockSpec(memory_space=VMEM)] * len(args)

    return pl.pallas_call(
        functools.partial(fused_forward_kernel,
                          num_layers=NUM_LAYERS, num_heads=NUM_HEADS, eps=LN_EPS,
                          seq_rep=sequence_length, batch=B, seq_len=S),
        out_shape=jax.ShapeDtypeStruct((B, sequence_length, S), jnp.float32),
        in_specs=in_specs,
        out_specs=pl.BlockSpec(memory_space=VMEM),
    )(*args)


# ------------------------------ params ------------------------------------------
def init_params(key):
    E, V, S, F, L = (FEATURE_EMBEDDING_SIZE, FEATURE_VOCAB_SIZE, FEATURE_SEQ_LEN,
                     FFN_DIM, NUM_LAYERS)
    initrange = 0.1
    keys = jax.random.split(key, 4)

    emb = jax.random.uniform(keys[0], (V, E), jnp.float32, -initrange, initrange)

    # positional-encoding buffer pe: [S, 1, E]
    position = np.arange(S, dtype=np.float32)[:, None]
    div_term = np.exp(np.arange(0, E, 2, dtype=np.float32) * (-math.log(10000.0) / E))
    pe = np.zeros((S, 1, E), dtype=np.float32)
    pe[:, 0, 0::2] = np.sin(position * div_term)
    pe[:, 0, 1::2] = np.cos(position * div_term)

    def u(k, shape):
        return jax.random.uniform(k, shape, jnp.float32, -initrange, initrange)

    lk = jax.random.split(keys[1], 8)
    return dict(
        emb=emb, pe=jnp.asarray(pe),
        # per-layer weights stacked on a leading L axis, math layout [in, out]
        wq=u(lk[0], (L, E, E)), wk=u(lk[1], (L, E, E)), wv=u(lk[2], (L, E, E)),
        bq=jnp.zeros((L, 1, E), jnp.float32), bk=jnp.zeros((L, 1, E), jnp.float32),
        bv=jnp.zeros((L, 1, E), jnp.float32),
        wo=u(lk[3], (L, E, E)), bo=jnp.zeros((L, 1, E), jnp.float32),
        w1=u(lk[4], (L, E, F)), b1=u(lk[5], (L, 1, F)),
        w2=u(lk[6], (L, F, E)), b2=u(lk[7], (L, 1, E)),
        ln1w=jnp.ones((L, 1, E), jnp.float32), ln1b=jnp.zeros((L, 1, E), jnp.float32),
        ln2w=jnp.ones((L, 1, E), jnp.float32), ln2b=jnp.zeros((L, 1, E), jnp.float32),
        lnf_w=jnp.ones((1, E), jnp.float32), lnf_b=jnp.zeros((1, E), jnp.float32),
        wm=u(keys[2], (E, V)), bm=jnp.zeros((1, V), jnp.float32),
        wr=u(keys[3], (1, V)), br=jnp.zeros((1, 1), jnp.float32),
    )


def prepare_kernel_params(params):
    """Kernel-side weight prep (done once, outside the kernel):
       * sqrt(E) folded into the embedding table
       * Q/K/V weights fused to [L, E, 3E] with 1/sqrt(Dh) folded into Q
       * matmul weights cast to bf16 (MXU inputs), everything else f32
       * mapper+reducer folded into one [1,E] vector + scalar bias."""
    E = FEATURE_EMBEDDING_SIZE
    Dh = E // NUM_HEADS
    inv_sqrt_dh = 1.0 / math.sqrt(Dh)

    kp = {'pe': params['pe']}
    kp['emb'] = params['emb'] * math.sqrt(E)                       # f32

    wq = params['wq'] * inv_sqrt_dh
    bq = params['bq'] * inv_sqrt_dh
    kp['wqkv'] = jnp.concatenate([wq, params['wk'], params['wv']],
                                 axis=-1).astype(jnp.bfloat16)     # [L, E, 3E]
    kp['bqkv'] = jnp.concatenate([bq, params['bk'], params['bv']], axis=-1)

    kp['wo'] = params['wo'].astype(jnp.bfloat16); kp['bo'] = params['bo']
    kp['w1'] = params['w1'].astype(jnp.bfloat16); kp['b1'] = params['b1']
    kp['w2'] = params['w2'].astype(jnp.bfloat16); kp['b2'] = params['b2']
    for n in ('ln1w', 'ln1b', 'ln2w', 'ln2b', 'lnf_w', 'lnf_b'):
        kp[n] = params[n]

    # reduced = xn @ (wm @ wr^T) + (bm @ wr^T + br)   (exact fold up to rounding)
    wr_col = params['wr'].reshape(-1, 1)                           # [V, 1]
    kp['w_mr'] = (params['wm'] @ wr_col).T                         # [1, E] f32
    kp['b_mr'] = params['bm'] @ wr_col + params['br']              # [1, 1] f32
    return kp


# ------------------------------ pure-JAX f32 reference ---------------------------
def reference_forward(params, features, sequence_length):
    B, S = features.shape
    E, H = FEATURE_EMBEDDING_SIZE, NUM_HEADS
    Dh = E // H
    x = jnp.take(params['emb'], features, axis=0) * math.sqrt(E)
    x = x + params['pe'][:B]                                   # pe[:x.size(0)], bcast over S
    for l in range(NUM_LAYERS):
        x2d = x.reshape(B * S, E)
        q = (x2d @ params['wq'][l] + params['bq'][l]).reshape(B, S, H, Dh)
        k = (x2d @ params['wk'][l] + params['bk'][l]).reshape(B, S, H, Dh)
        v = (x2d @ params['wv'][l] + params['bv'][l]).reshape(B, S, H, Dh)
        s = jnp.einsum('bqhd,bkhd->bhqk', q, k) / math.sqrt(Dh)
        a = jax.nn.softmax(s, axis=-1)
        ctx = jnp.einsum('bhqk,bkhd->bqhd', a, v).reshape(B * S, E)
        attn = (ctx @ params['wo'][l] + params['bo'][l]).reshape(B, S, E)
        x1 = _layer_norm(x + attn, params['ln1w'][l], params['ln1b'][l], LN_EPS)
        h = jax.nn.relu(x1.reshape(B * S, E) @ params['w1'][l] + params['b1'][l])
        ffn = (h @ params['w2'][l] + params['b2'][l]).reshape(B, S, E)
        x = _layer_norm(x1 + ffn, params['ln2w'][l], params['ln2b'][l], LN_EPS)
    xn = _layer_norm(x, params['lnf_w'], params['lnf_b'], LN_EPS)
    mapped = xn.reshape(B * S, E) @ params['wm'] + params['bm']
    reduced = mapped @ params['wr'].reshape(-1, 1) + params['br']      # [B*S, 1]
    reshaped = reduced.reshape(-1, 1, S)
    return jnp.tile(reshaped, (1, sequence_length, 1))


# ------------------------------ main ---------------------------------------------
if __name__ == "__main__":
    key = jax.random.PRNGKey(0)
    pkey, fkey = jax.random.split(key)
    params = init_params(pkey)
    kparams = prepare_kernel_params(params)
    features = jax.random.randint(fkey, (BATCH, FEATURE_SEQ_LEN), 0,
                                  FEATURE_VOCAB_SIZE, dtype=jnp.int32)

    out = feature_transformer_forward(kparams, features, OUT_REPEAT)
    out = jax.block_until_ready(out)
    assert out.shape == (BATCH, OUT_REPEAT, FEATURE_SEQ_LEN), out.shape

    ref = reference_forward(params, features, OUT_REPEAT)
    # Tolerance accounts for bf16 MXU weights / approx reciprocal vs the f32 reference.
    np.testing.assert_allclose(np.asarray(out), np.asarray(ref), rtol=2e-2, atol=2e-2)
    print("KERNEL_OK")
</pallas_src>

<mosaic_0001>
module attributes {stable_mosaic.version = 11 : i64} {
  func.func @fused_forward_kernel(%arg0: memref<16x1xi32, #tpu.memory_space<vmem>>, %arg1: memref<64x32xf32, #tpu.memory_space<vmem>>, %arg2: memref<16x32xf32, #tpu.memory_space<vmem>>, %arg3: memref<16x16xf32, #tpu.memory_space<vmem>>, %arg4: memref<2x32x96xbf16, #tpu.memory_space<vmem>>, %arg5: memref<2x1x96xf32, #tpu.memory_space<vmem>>, %arg6: memref<2x32x32xbf16, #tpu.memory_space<vmem>>, %arg7: memref<2x1x32xf32, #tpu.memory_space<vmem>>, %arg8: memref<2x32x64xbf16, #tpu.memory_space<vmem>>, %arg9: memref<2x1x64xf32, #tpu.memory_space<vmem>>, %arg10: memref<2x64x32xbf16, #tpu.memory_space<vmem>>, %arg11: memref<2x1x32xf32, #tpu.memory_space<vmem>>, %arg12: memref<2x1x32xf32, #tpu.memory_space<vmem>>, %arg13: memref<2x1x32xf32, #tpu.memory_space<vmem>>, %arg14: memref<2x1x32xf32, #tpu.memory_space<vmem>>, %arg15: memref<2x1x32xf32, #tpu.memory_space<vmem>>, %arg16: memref<1x32xf32, #tpu.memory_space<vmem>>, %arg17: memref<1x32xf32, #tpu.memory_space<vmem>>, %arg18: memref<1x32xf32, #tpu.memory_space<vmem>>, %arg19: memref<1x1xf32, #tpu.memory_space<vmem>>, %arg20: memref<2x8x8xf32, #tpu.memory_space<vmem>>) attributes {dimension_semantics = [], scalar_prefetch = 0 : i64, scratch_operands = 0 : i64, tpu.core_type = #tpu.core_type<tc>} {
    %c0 = arith.constant 0 : index
    %c0_0 = arith.constant 0 : index
    %0 = vector.load %arg0[%c0, %c0_0] : memref<16x1xi32, #tpu.memory_space<vmem>>, vector<16x1xi32>
    %1 = tpu.iota {dimensions = array<i32: 1>} : vector<16x64xi32>
    %2 = vector.broadcast %0 : vector<16x1xi32> to vector<16x64xi32>
    %3 = arith.cmpi eq, %1, %2 : vector<16x64xi32>
    %4 = arith.extui %3 : vector<16x64xi1> to vector<16x64xi32>
    %5 = arith.sitofp %4 : vector<16x64xi32> to vector<16x64xf32>
    %c0_1 = arith.constant 0 : index
    %c0_2 = arith.constant 0 : index
    %6 = vector.load %arg1[%c0_1, %c0_2] : memref<64x32xf32, #tpu.memory_space<vmem>>, vector<64x32xf32>
    %cst = arith.constant dense<0.000000e+00> : vector<16x32xf32>
    %7 = tpu.matmul %5, %6, %cst {dimension_numbers = #tpu.dot_dimension_numbers<[1], [0], [0], [1], [0, 0, 1, 1], [], []>} : vector<16x64xf32>, vector<64x32xf32>, vector<16x32xf32> -> vector<16x32xf32>
    %c0_3 = arith.constant 0 : index
    %c0_4 = arith.constant 0 : index
    %8 = vector.load %arg2[%c0_3, %c0_4] : memref<16x32xf32, #tpu.memory_space<vmem>>, vector<16x32xf32>
    %9 = arith.addf %7, %8 : vector<16x32xf32>
    %c0_5 = arith.constant 0 : index
    %c0_6 = arith.constant 0 : index
    %10 = vector.load %arg3[%c0_5, %c0_6] : memref<16x16xf32, #tpu.memory_space<vmem>>, vector<16x16xf32>
    %11 = arith.truncf %9 : vector<16x32xf32> to vector<16x32xbf16>
    %c0_7 = arith.constant 0 : index
    %c0_8 = arith.constant 0 : index
    %c0_9 = arith.constant 0 : index
    %12 = vector.load %arg4[%c0_7, %c0_8, %c0_9] : memref<2x32x96xbf16, #tpu.memory_space<vmem>>, vector<1x32x96xbf16>
    %13 = vector.shape_cast %12 : vector<1x32x96xbf16> to vector<32x96xbf16>
    %cst_10 = arith.constant dense<0.000000e+00> : vector<16x96xf32>
    %14 = tpu.matmul %11, %13, %cst_10 {dimension_numbers = #tpu.dot_dimension_numbers<[1], [0], [0], [1], [0, 0, 1, 1], [], []>} : vector<16x32xbf16>, vector<32x96xbf16>, vector<16x96xf32> -> vector<16x96xf32>
    %c0_11 = arith.constant 0 : index
    %c0_12 = arith.constant 0 : index
    %c0_13 = arith.constant 0 : index
    %15 = vector.load %arg5[%c0_11, %c0_12, %c0_13] : memref<2x1x96xf32, #tpu.memory_space<vmem>>, vector<1x1x96xf32>
    %16 = vector.shape_cast %15 : vector<1x1x96xf32> to vector<1x96xf32>
    %17 = vector.broadcast %16 : vector<1x96xf32> to vector<16x96xf32>
    %18 = arith.addf %14, %17 : vector<16x96xf32>
    %19 = vector.extract_strided_slice %18 {offsets = [0, 0], sizes = [16, 32], strides = [1, 1]} : vector<16x96xf32> to vector<16x32xf32>
    %20 = vector.extract_strided_slice %18 {offsets = [0, 32], sizes = [16, 32], strides = [1, 1]} : vector<16x96xf32> to vector<16x32xf32>
    %21 = vector.extract_strided_slice %18 {offsets = [0, 64], sizes = [16, 32], strides = [1, 1]} : vector<16x96xf32> to vector<16x32xf32>
    %22 = vector.extract_strided_slice %19 {offsets = [0, 0], sizes = [16, 8], strides = [1, 1]} : vector<16x32xf32> to vector<16x8xf32>
    %23 = vector.extract_strided_slice %20 {offsets = [0, 0], sizes = [16, 8], strides = [1, 1]} : vector<16x32xf32> to vector<16x8xf32>
    %24 = vector.extract_strided_slice %21 {offsets = [0, 0], sizes = [16, 8], strides = [1, 1]} : vector<16x32xf32> to vector<16x8xf32>
    %cst_14 = arith.constant dense<0.000000e+00> : vector<16x16xf32>
    %25 = tpu.matmul %22, %23, %cst_14 {dimension_numbers = #tpu.dot_dimension_numbers<[1], [1], [0], [0], [0, 0, 1, 0], [], []>} : vector<16x8xf32>, vector<16x8xf32>, vector<16x16xf32> -> vector<16x16xf32>
    %26 = arith.addf %25, %10 : vector<16x16xf32>
    %cst_15 = arith.constant dense<0xFF800000> : vector<16xf32>
    %27 = vector.multi_reduction <maximumf>, %26, %cst_15 [1] : vector<16x16xf32> to vector<16xf32>
    %28 = vector.shape_cast %27 : vector<16xf32> to vector<16x1xf32>
    %29 = vector.broadcast %28 : vector<16x1xf32> to vector<16x16xf32>
    %30 = arith.subf %26, %29 : vector<16x16xf32>
    %31 = math.exp %30 : vector<16x16xf32>
    %cst_16 = arith.constant dense<0.000000e+00> : vector<16xf32>
    %32 = vector.multi_reduction <add>, %31, %cst_16 [1] : vector<16x16xf32> to vector<16xf32>
    %33 = vector.shape_cast %32 : vector<16xf32> to vector<16x1xf32>
    %34 = tpu.reciprocal %33 {approx = true} : vector<16x1xf32> -> vector<16x1xf32>
    %35 = vector.broadcast %34 : vector<16x1xf32> to vector<16x16xf32>
    %36 = arith.mulf %31, %35 : vector<16x16xf32>
    %cst_17 = arith.constant dense<0.000000e+00> : vector<16x8xf32>
    %37 = tpu.matmul %36, %24, %cst_17 {dimension_numbers = #tpu.dot_dimension_numbers<[1], [0], [0], [1], [0, 0, 1, 1], [], []>} : vector<16x16xf32>, vector<16x8xf32>, vector<16x8xf32> -> vector<16x8xf32>
    %38 = vector.extract_strided_slice %19 {offsets = [0, 8], sizes = [16, 8], strides = [1, 1]} : vector<16x32xf32> to vector<16x8xf32>
    %39 = vector.extract_strided_slice %20 {offsets = [0, 8], sizes = [16, 8], strides = [1, 1]} : vector<16x32xf32> to vector<16x8xf32>
    %40 = vector.extract_strided_slice %21 {offsets = [0, 8], sizes = [16, 8], strides = [1, 1]} : vector<16x32xf32> to vector<16x8xf32>
    %cst_18 = arith.constant dense<0.000000e+00> : vector<16x16xf32>
    %41 = tpu.matmul %38, %39, %cst_18 {dimension_numbers = #tpu.dot_dimension_numbers<[1], [1], [0], [0], [0, 0, 1, 0], [], []>} : vector<16x8xf32>, vector<16x8xf32>, vector<16x16xf32> -> vector<16x16xf32>
    %42 = arith.addf %41, %10 : vector<16x16xf32>
    %cst_19 = arith.constant dense<0xFF800000> : vector<16xf32>
    %43 = vector.multi_reduction <maximumf>, %42, %cst_19 [1] : vector<16x16xf32> to vector<16xf32>
    %44 = vector.shape_cast %43 : vector<16xf32> to vector<16x1xf32>
    %45 = vector.broadcast %44 : vector<16x1xf32> to vector<16x16xf32>
    %46 = arith.subf %42, %45 : vector<16x16xf32>
    %47 = math.exp %46 : vector<16x16xf32>
    %cst_20 = arith.constant dense<0.000000e+00> : vector<16xf32>
    %48 = vector.multi_reduction <add>, %47, %cst_20 [1] : vector<16x16xf32> to vector<16xf32>
    %49 = vector.shape_cast %48 : vector<16xf32> to vector<16x1xf32>
    %50 = tpu.reciprocal %49 {approx = true} : vector<16x1xf32> -> vector<16x1xf32>
    %51 = vector.broadcast %50 : vector<16x1xf32> to vector<16x16xf32>
    %52 = arith.mulf %47, %51 : vector<16x16xf32>
    %cst_21 = arith.constant dense<0.000000e+00> : vector<16x8xf32>
    %53 = tpu.matmul %52, %40, %cst_21 {dimension_numbers = #tpu.dot_dimension_numbers<[1], [0], [0], [1], [0, 0, 1, 1], [], []>} : vector<16x16xf32>, vector<16x8xf32>, vector<16x8xf32> -> vector<16x8xf32>
    %54 = vector.extract_strided_slice %19 {offsets = [0, 16], sizes = [16, 8], strides = [1, 1]} : vector<16x32xf32> to vector<16x8xf32>
    %55 = vector.extract_strided_slice %20 {offsets = [0, 16], sizes = [16, 8], strides = [1, 1]} : vector<16x32xf32> to vector<16x8xf32>
    %56 = vector.extract_strided_slice %21 {offsets = [0, 16], sizes = [16, 8], strides = [1, 1]} : vector<16x32xf32> to vector<16x8xf32>
    %cst_22 = arith.constant dense<0.000000e+00> : vector<16x16xf32>
    %57 = tpu.matmul %54, %55, %cst_22 {dimension_numbers = #tpu.dot_dimension_numbers<[1], [1], [0], [0], [0, 0, 1, 0], [], []>} : vector<16x8xf32>, vector<16x8xf32>, vector<16x16xf32> -> vector<16x16xf32>
    %58 = arith.addf %57, %10 : vector<16x16xf32>
    %cst_23 = arith.constant dense<0xFF800000> : vector<16xf32>
    %59 = vector.multi_reduction <maximumf>, %58, %cst_23 [1] : vector<16x16xf32> to vector<16xf32>
    %60 = vector.shape_cast %59 : vector<16xf32> to vector<16x1xf32>
    %61 = vector.broadcast %60 : vector<16x1xf32> to vector<16x16xf32>
    %62 = arith.subf %58, %61 : vector<16x16xf32>
    %63 = math.exp %62 : vector<16x16xf32>
    %cst_24 = arith.constant dense<0.000000e+00> : vector<16xf32>
    %64 = vector.multi_reduction <add>, %63, %cst_24 [1] : vector<16x16xf32> to vector<16xf32>
    %65 = vector.shape_cast %64 : vector<16xf32> to vector<16x1xf32>
    %66 = tpu.reciprocal %65 {approx = true} : vector<16x1xf32> -> vector<16x1xf32>
    %67 = vector.broadcast %66 : vector<16x1xf32> to vector<16x16xf32>
    %68 = arith.mulf %63, %67 : vector<16x16xf32>
    %cst_25 = arith.constant dense<0.000000e+00> : vector<16x8xf32>
    %69 = tpu.matmul %68, %56, %cst_25 {dimension_numbers = #tpu.dot_dimension_numbers<[1], [0], [0], [1], [0, 0, 1, 1], [], []>} : vector<16x16xf32>, vector<16x8xf32>, vector<16x8xf32> -> vector<16x8xf32>
    %70 = vector.extract_strided_slice %19 {offsets = [0, 24], sizes = [16, 8], strides = [1, 1]} : vector<16x32xf32> to vector<16x8xf32>
    %71 = vector.extract_strided_slice %20 {offsets = [0, 24], sizes = [16, 8], strides = [1, 1]} : vector<16x32xf32> to vector<16x8xf32>
    %72 = vector.extract_strided_slice %21 {offsets = [0, 24], sizes = [16, 8], strides = [1, 1]} : vector<16x32xf32> to vector<16x8xf32>
    %cst_26 = arith.constant dense<0.000000e+00> : vector<16x16xf32>
    %73 = tpu.matmul %70, %71, %cst_26 {dimension_numbers = #tpu.dot_dimension_numbers<[1], [1], [0], [0], [0, 0, 1, 0], [], []>} : vector<16x8xf32>, vector<16x8xf32>, vector<16x16xf32> -> vector<16x16xf32>
    %74 = arith.addf %73, %10 : vector<16x16xf32>
    %cst_27 = arith.constant dense<0xFF800000> : vector<16xf32>
    %75 = vector.multi_reduction <maximumf>, %74, %cst_27 [1] : vector<16x16xf32> to vector<16xf32>
    %76 = vector.shape_cast %75 : vector<16xf32> to vector<16x1xf32>
    %77 = vector.broadcast %76 : vector<16x1xf32> to vector<16x16xf32>
    %78 = arith.subf %74, %77 : vector<16x16xf32>
    %79 = math.exp %78 : vector<16x16xf32>
    %cst_28 = arith.constant dense<0.000000e+00> : vector<16xf32>
    %80 = vector.multi_reduction <add>, %79, %cst_28 [1] : vector<16x16xf32> to vector<16xf32>
    %81 = vector.shape_cast %80 : vector<16xf32> to vector<16x1xf32>
    %82 = tpu.reciprocal %81 {approx = true} : vector<16x1xf32> -> vector<16x1xf32>
    %83 = vector.broadcast %82 : vector<16x1xf32> to vector<16x16xf32>
    %84 = arith.mulf %79, %83 : vector<16x16xf32>
    %cst_29 = arith.constant dense<0.000000e+00> : vector<16x8xf32>
    %85 = tpu.matmul %84, %72, %cst_29 {dimension_numbers = #tpu.dot_dimension_numbers<[1], [0], [0], [1], [0, 0, 1, 1], [], []>} : vector<16x16xf32>, vector<16x8xf32>, vector<16x8xf32> -> vector<16x8xf32>
    %86 = tpu.concatenate %37, %53, %69, %85 in 1 : vector<16x8xf32>, vector<16x8xf32>, vector<16x8xf32>, vector<16x8xf32> -> vector<16x32xf32>
    %87 = arith.truncf %86 : vector<16x32xf32> to vector<16x32xbf16>
    %c0_30 = arith.constant 0 : index
    %c0_31 = arith.constant 0 : index
    %c0_32 = arith.constant 0 : index
    %88 = vector.load %arg6[%c0_30, %c0_31, %c0_32] : memref<2x32x32xbf16, #tpu.memory_space<vmem>>, vector<1x32x32xbf16>
    %89 = vector.shape_cast %88 : vector<1x32x32xbf16> to vector<32x32xbf16>
    %cst_33 = arith.constant dense<0.000000e+00> : vector<16x32xf32>
    %90 = tpu.matmul %87, %89, %cst_33 {dimension_numbers = #tpu.dot_dimension_numbers<[1], [0], [0], [1], [0, 0, 1, 1], [], []>} : vector<16x32xbf16>, vector<32x32xbf16>, vector<16x32xf32> -> vector<16x32xf32>
    %c0_34 = arith.constant 0 : index
    %c0_35 = arith.constant 0 : index
    %c0_36 = arith.constant 0 : index
    %91 = vector.load %arg7[%c0_34, %c0_35, %c0_36] : memref<2x1x32xf32, #tpu.memory_space<vmem>>, vector<1x1x32xf32>
    %92 = vector.shape_cast %91 : vector<1x1x32xf32> to vector<1x32xf32>
    %93 = vector.broadcast %92 : vector<1x32xf32> to vector<16x32xf32>
    %94 = arith.addf %90, %93 : vector<16x32xf32>
    %95 = arith.addf %9, %94 : vector<16x32xf32>
    %c0_37 = arith.constant 0 : index
    %c0_38 = arith.constant 0 : index
    %c0_39 = arith.constant 0 : index
    %96 = vector.load %arg12[%c0_37, %c0_38, %c0_39] : memref<2x1x32xf32, #tpu.memory_space<vmem>>, vector<1x1x32xf32>
    %97 = vector.shape_cast %96 : vector<1x1x32xf32> to vector<1x32xf32>
    %c0_40 = arith.constant 0 : index
    %c0_41 = arith.constant 0 : index
    %c0_42 = arith.constant 0 : index
    %98 = vector.load %arg13[%c0_40, %c0_41, %c0_42] : memref<2x1x32xf32, #tpu.memory_space<vmem>>, vector<1x1x32xf32>
    %99 = vector.shape_cast %98 : vector<1x1x32xf32> to vector<1x32xf32>
    %cst_43 = arith.constant dense<0.000000e+00> : vector<16xf32>
    %100 = vector.multi_reduction <add>, %95, %cst_43 [1] : vector<16x32xf32> to vector<16xf32>
    %101 = vector.shape_cast %100 : vector<16xf32> to vector<16x1xf32>
    %cst_44 = arith.constant 3.200000e+01 : f32
    %102 = vector.broadcast %cst_44 : f32 to vector<16x1xf32>
    %103 = arith.divf %101, %102 : vector<16x1xf32>
    %104 = vector.broadcast %103 : vector<16x1xf32> to vector<16x32xf32>
    %105 = arith.subf %95, %104 : vector<16x32xf32>
    %106 = arith.mulf %105, %105 : vector<16x32xf32>
    %cst_45 = arith.constant dense<0.000000e+00> : vector<16xf32>
    %107 = vector.multi_reduction <add>, %106, %cst_45 [1] : vector<16x32xf32> to vector<16xf32>
    %108 = vector.shape_cast %107 : vector<16xf32> to vector<16x1xf32>
    %cst_46 = arith.constant 3.200000e+01 : f32
    %109 = vector.broadcast %cst_46 : f32 to vector<16x1xf32>
    %110 = arith.divf %108, %109 : vector<16x1xf32>
    %111 = vector.broadcast %103 : vector<16x1xf32> to vector<16x32xf32>
    %112 = arith.subf %95, %111 : vector<16x32xf32>
    %cst_47 = arith.constant 9.99999974E-6 : f32
    %113 = vector.broadcast %cst_47 : f32 to vector<16x1xf32>
    %114 = arith.addf %110, %113 : vector<16x1xf32>
    %115 = math.rsqrt %114 : vector<16x1xf32>
    %116 = vector.broadcast %115 : vector<16x1xf32> to vector<16x32xf32>
    %117 = arith.mulf %112, %116 : vector<16x32xf32>
    %118 = vector.broadcast %97 : vector<1x32xf32> to vector<16x32xf32>
    %119 = arith.mulf %117, %118 : vector<16x32xf32>
    %120 = vector.broadcast %99 : vector<1x32xf32> to vector<16x32xf32>
    %121 = arith.addf %119, %120 : vector<16x32xf32>
    %122 = arith.truncf %121 : vector<16x32xf32> to vector<16x32xbf16>
    %c0_48 = arith.constant 0 : index
    %c0_49 = arith.constant 0 : index
    %c0_50 = arith.constant 0 : index
    %123 = vector.load %arg8[%c0_48, %c0_49, %c0_50] : memref<2x32x64xbf16, #tpu.memory_space<vmem>>, vector<1x32x64xbf16>
    %124 = vector.shape_cast %123 : vector<1x32x64xbf16> to vector<32x64xbf16>
    %cst_51 = arith.constant dense<0.000000e+00> : vector<16x64xf32>
    %125 = tpu.matmul %122, %124, %cst_51 {dimension_numbers = #tpu.dot_dimension_numbers<[1], [0], [0], [1], [0, 0, 1, 1], [], []>} : vector<16x32xbf16>, vector<32x64xbf16>, vector<16x64xf32> -> vector<16x64xf32>
    %c0_52 = arith.constant 0 : index
    %c0_53 = arith.constant 0 : index
    %c0_54 = arith.constant 0 : index
    %126 = vector.load %arg9[%c0_52, %c0_53, %c0_54] : memref<2x1x64xf32, #tpu.memory_space<vmem>>, vector<1x1x64xf32>
    %127 = vector.shape_cast %126 : vector<1x1x64xf32> to vector<1x64xf32>
    %128 = vector.broadcast %127 : vector<1x64xf32> to vector<16x64xf32>
    %129 = arith.addf %125, %128 : vector<16x64xf32>
    %cst_55 = arith.constant 0.000000e+00 : f32
    %130 = vector.broadcast %cst_55 : f32 to vector<16x64xf32>
    %131 = arith.maximumf %129, %130 : vector<16x64xf32>
    %132 = arith.truncf %131 : vector<16x64xf32> to vector<16x64xbf16>
    %c0_56 = arith.constant 0 : index
    %c0_57 = arith.constant 0 : index
    %c0_58 = arith.constant 0 : index
    %133 = vector.load %arg10[%c0_56, %c0_57, %c0_58] : memref<2x64x32xbf16, #tpu.memory_space<vmem>>, vector<1x64x32xbf16>
    %134 = vector.shape_cast %133 : vector<1x64x32xbf16> to vector<64x32xbf16>
    %cst_59 = arith.constant dense<0.000000e+00> : vector<16x32xf32>
    %135 = tpu.matmul %132, %134, %cst_59 {dimension_numbers = #tpu.dot_dimension_numbers<[1], [0], [0], [1], [0, 0, 1, 1], [], []>} : vector<16x64xbf16>, vector<64x32xbf16>, vector<16x32xf32> -> vector<16x32xf32>
    %c0_60 = arith.constant 0 : index
    %c0_61 = arith.constant 0 : index
    %c0_62 = arith.constant 0 : index
    %136 = vector.load %arg11[%c0_60, %c0_61, %c0_62] : memref<2x1x32xf32, #tpu.memory_space<vmem>>, vector<1x1x32xf32>
    %137 = vector.shape_cast %136 : vector<1x1x32xf32> to vector<1x32xf32>
    %138 = vector.broadcast %137 : vector<1x32xf32> to vector<16x32xf32>
    %139 = arith.addf %135, %138 : vector<16x32xf32>
    %140 = arith.addf %121, %139 : vector<16x32xf32>
    %c0_63 = arith.constant 0 : index
    %c0_64 = arith.constant 0 : index
    %c0_65 = arith.constant 0 : index
    %141 = vector.load %arg14[%c0_63, %c0_64, %c0_65] : memref<2x1x32xf32, #tpu.memory_space<vmem>>, vector<1x1x32xf32>
    %142 = vector.shape_cast %141 : vector<1x1x32xf32> to vector<1x32xf32>
    %c0_66 = arith.constant 0 : index
    %c0_67 = arith.constant 0 : index
    %c0_68 = arith.constant 0 : index
    %143 = vector.load %arg15[%c0_66, %c0_67, %c0_68] : memref<2x1x32xf32, #tpu.memory_space<vmem>>, vector<1x1x32xf32>
    %144 = vector.shape_cast %143 : vector<1x1x32xf32> to vector<1x32xf32>
    %cst_69 = arith.constant dense<0.000000e+00> : vector<16xf32>
    %145 = vector.multi_reduction <add>, %140, %cst_69 [1] : vector<16x32xf32> to vector<16xf32>
    %146 = vector.shape_cast %145 : vector<16xf32> to vector<16x1xf32>
    %cst_70 = arith.constant 3.200000e+01 : f32
    %147 = vector.broadcast %cst_70 : f32 to vector<16x1xf32>
    %148 = arith.divf %146, %147 : vector<16x1xf32>
    %149 = vector.broadcast %148 : vector<16x1xf32> to vector<16x32xf32>
    %150 = arith.subf %140, %149 : vector<16x32xf32>
    %151 = arith.mulf %150, %150 : vector<16x32xf32>
    %cst_71 = arith.constant dense<0.000000e+00> : vector<16xf32>
    %152 = vector.multi_reduction <add>, %151, %cst_71 [1] : vector<16x32xf32> to vector<16xf32>
    %153 = vector.shape_cast %152 : vector<16xf32> to vector<16x1xf32>
    %cst_72 = arith.constant 3.200000e+01 : f32
    %154 = vector.broadcast %cst_72 : f32 to vector<16x1xf32>
    %155 = arith.divf %153, %154 : vector<16x1xf32>
    %156 = vector.broadcast %148 : vector<16x1xf32> to vector<16x32xf32>
    %157 = arith.subf %140, %156 : vector<16x32xf32>
    %cst_73 = arith.constant 9.99999974E-6 : f32
    %158 = vector.broadcast %cst_73 : f32 to vector<16x1xf32>
    %159 = arith.addf %155, %158 : vector<16x1xf32>
    %160 = math.rsqrt %159 : vector<16x1xf32>
    %161 = vector.broadcast %160 : vector<16x1xf32> to vector<16x32xf32>
    %162 = arith.mulf %157, %161 : vector<16x32xf32>
    %163 = vector.broadcast %142 : vector<1x32xf32> to vector<16x32xf32>
    %164 = arith.mulf %162, %163 : vector<16x32xf32>
    %165 = vector.broadcast %144 : vector<1x32xf32> to vector<16x32xf32>
    %166 = arith.addf %164, %165 : vector<16x32xf32>
    %167 = arith.truncf %166 : vector<16x32xf32> to vector<16x32xbf16>
    %c1 = arith.constant 1 : index
    %c0_74 = arith.constant 0 : index
    %c0_75 = arith.constant 0 : index
    %168 = vector.load %arg4[%c1, %c0_74, %c0_75] : memref<2x32x96xbf16, #tpu.memory_space<vmem>>, vector<1x32x96xbf16>
    %169 = vector.shape_cast %168 : vector<1x32x96xbf16> to vector<32x96xbf16>
    %cst_76 = arith.constant dense<0.000000e+00> : vector<16x96xf32>
    %170 = tpu.matmul %167, %169, %cst_76 {dimension_numbers = #tpu.dot_dimension_numbers<[1], [0], [0], [1], [0, 0, 1, 1], [], []>} : vector<16x32xbf16>, vector<32x96xbf16>, vector<16x96xf32> -> vector<16x96xf32>
    %c1_77 = arith.constant 1 : index
    %c0_78 = arith.constant 0 : index
    %c0_79 = arith.constant 0 : index
    %171 = vector.load %arg5[%c1_77, %c0_78, %c0_79] : memref<2x1x96xf32, #tpu.memory_space<vmem>>, vector<1x1x96xf32>
    %172 = vector.shape_cast %171 : vector<1x1x96xf32> to vector<1x96xf32>
    %173 = vector.broadcast %172 : vector<1x96xf32> to vector<16x96xf32>
    %174 = arith.addf %170, %173 : vector<16x96xf32>
    %175 = vector.extract_strided_slice %174 {offsets = [0, 0], sizes = [16, 32], strides = [1, 1]} : vector<16x96xf32> to vector<16x32xf32>
    %176 = vector.extract_strided_slice %174 {offsets = [0, 32], sizes = [16, 32], strides = [1, 1]} : vector<16x96xf32> to vector<16x32xf32>
    %177 = vector.extract_strided_slice %174 {offsets = [0, 64], sizes = [16, 32], strides = [1, 1]} : vector<16x96xf32> to vector<16x32xf32>
    %178 = vector.extract_strided_slice %175 {offsets = [0, 0], sizes = [16, 8], strides = [1, 1]} : vector<16x32xf32> to vector<16x8xf32>
    %179 = vector.extract_strided_slice %176 {offsets = [0, 0], sizes = [16, 8], strides = [1, 1]} : vector<16x32xf32> to vector<16x8xf32>
    %180 = vector.extract_strided_slice %177 {offsets = [0, 0], sizes = [16, 8], strides = [1, 1]} : vector<16x32xf32> to vector<16x8xf32>
    %cst_80 = arith.constant dense<0.000000e+00> : vector<16x16xf32>
    %181 = tpu.matmul %178, %179, %cst_80 {dimension_numbers = #tpu.dot_dimension_numbers<[1], [1], [0], [0], [0, 0, 1, 0], [], []>} : vector<16x8xf32>, vector<16x8xf32>, vector<16x16xf32> -> vector<16x16xf32>
    %182 = arith.addf %181, %10 : vector<16x16xf32>
    %cst_81 = arith.constant dense<0xFF800000> : vector<16xf32>
    %183 = vector.multi_reduction <maximumf>, %182, %cst_81 [1] : vector<16x16xf32> to vector<16xf32>
    %184 = vector.shape_cast %183 : vector<16xf32> to vector<16x1xf32>
    %185 = vector.broadcast %184 : vector<16x1xf32> to vector<16x16xf32>
    %186 = arith.subf %182, %185 : vector<16x16xf32>
    %187 = math.exp %186 : vector<16x16xf32>
    %cst_82 = arith.constant dense<0.000000e+00> : vector<16xf32>
    %188 = vector.multi_reduction <add>, %187, %cst_82 [1] : vector<16x16xf32> to vector<16xf32>
    %189 = vector.shape_cast %188 : vector<16xf32> to vector<16x1xf32>
    %190 = tpu.reciprocal %189 {approx = true} : vector<16x1xf32> -> vector<16x1xf32>
    %191 = vector.broadcast %190 : vector<16x1xf32> to vector<16x16xf32>
    %192 = arith.mulf %187, %191 : vector<16x16xf32>
    %cst_83 = arith.constant dense<0.000000e+00> : vector<16x8xf32>
    %193 = tpu.matmul %192, %180, %cst_83 {dimension_numbers = #tpu.dot_dimension_numbers<[1], [0], [0], [1], [0, 0, 1, 1], [], []>} : vector<16x16xf32>, vector<16x8xf32>, vector<16x8xf32> -> vector<16x8xf32>
    %194 = vector.extract_strided_slice %175 {offsets = [0, 8], sizes = [16, 8], strides = [1, 1]} : vector<16x32xf32> to vector<16x8xf32>
    %195 = vector.extract_strided_slice %176 {offsets = [0, 8], sizes = [16, 8], strides = [1, 1]} : vector<16x32xf32> to vector<16x8xf32>
    %196 = vector.extract_strided_slice %177 {offsets = [0, 8], sizes = [16, 8], strides = [1, 1]} : vector<16x32xf32> to vector<16x8xf32>
    %cst_84 = arith.constant dense<0.000000e+00> : vector<16x16xf32>
    %197 = tpu.matmul %194, %195, %cst_84 {dimension_numbers = #tpu.dot_dimension_numbers<[1], [1], [0], [0], [0, 0, 1, 0], [], []>} : vector<16x8xf32>, vector<16x8xf32>, vector<16x16xf32> -> vector<16x16xf32>
    %198 = arith.addf %197, %10 : vector<16x16xf32>
    %cst_85 = arith.constant dense<0xFF800000> : vector<16xf32>
    %199 = vector.multi_reduction <maximumf>, %198, %cst_85 [1] : vector<16x16xf32> to vector<16xf32>
    %200 = vector.shape_cast %199 : vector<16xf32> to vector<16x1xf32>
    %201 = vector.broadcast %200 : vector<16x1xf32> to vector<16x16xf32>
    %202 = arith.subf %198, %201 : vector<16x16xf32>
    %203 = math.exp %202 : vector<16x16xf32>
    %cst_86 = arith.constant dense<0.000000e+00> : vector<16xf32>
    %204 = vector.multi_reduction <add>, %203, %cst_86 [1] : vector<16x16xf32> to vector<16xf32>
    %205 = vector.shape_cast %204 : vector<16xf32> to vector<16x1xf32>
    %206 = tpu.reciprocal %205 {approx = true} : vector<16x1xf32> -> vector<16x1xf32>
    %207 = vector.broadcast %206 : vector<16x1xf32> to vector<16x16xf32>
    %208 = arith.mulf %203, %207 : vector<16x16xf32>
    %cst_87 = arith.constant dense<0.000000e+00> : vector<16x8xf32>
    %209 = tpu.matmul %208, %196, %cst_87 {dimension_numbers = #tpu.dot_dimension_numbers<[1], [0], [0], [1], [0, 0, 1, 1], [], []>} : vector<16x16xf32>, vector<16x8xf32>, vector<16x8xf32> -> vector<16x8xf32>
    %210 = vector.extract_strided_slice %175 {offsets = [0, 16], sizes = [16, 8], strides = [1, 1]} : vector<16x32xf32> to vector<16x8xf32>
    %211 = vector.extract_strided_slice %176 {offsets = [0, 16], sizes = [16, 8], strides = [1, 1]} : vector<16x32xf32> to vector<16x8xf32>
    %212 = vector.extract_strided_slice %177 {offsets = [0, 16], sizes = [16, 8], strides = [1, 1]} : vector<16x32xf32> to vector<16x8xf32>
    %cst_88 = arith.constant dense<0.000000e+00> : vector<16x16xf32>
    %213 = tpu.matmul %210, %211, %cst_88 {dimension_numbers = #tpu.dot_dimension_numbers<[1], [1], [0], [0], [0, 0, 1, 0], [], []>} : vector<16x8xf32>, vector<16x8xf32>, vector<16x16xf32> -> vector<16x16xf32>
    %214 = arith.addf %213, %10 : vector<16x16xf32>
    %cst_89 = arith.constant dense<0xFF800000> : vector<16xf32>
    %215 = vector.multi_reduction <maximumf>, %214, %cst_89 [1] : vector<16x16xf32> to vector<16xf32>
    %216 = vector.shape_cast %215 : vector<16xf32> to vector<16x1xf32>
    %217 = vector.broadcast %216 : vector<16x1xf32> to vector<16x16xf32>
    %218 = arith.subf %214, %217 : vector<16x16xf32>
    %219 = math.exp %218 : vector<16x16xf32>
    %cst_90 = arith.constant dense<0.000000e+00> : vector<16xf32>
    %220 = vector.multi_reduction <add>, %219, %cst_90 [1] : vector<16x16xf32> to vector<16xf32>
    %221 = vector.shape_cast %220 : vector<16xf32> to vector<16x1xf32>
    %222 = tpu.reciprocal %221 {approx = true} : vector<16x1xf32> -> vector<16x1xf32>
    %223 = vector.broadcast %222 : vector<16x1xf32> to vector<16x16xf32>
    %224 = arith.mulf %219, %223 : vector<16x16xf32>
    %cst_91 = arith.constant dense<0.000000e+00> : vector<16x8xf32>
    %225 = tpu.matmul %224, %212, %cst_91 {dimension_numbers = #tpu.dot_dimension_numbers<[1], [0], [0], [1], [0, 0, 1, 1], [], []>} : vector<16x16xf32>, vector<16x8xf32>, vector<16x8xf32> -> vector<16x8xf32>
    %226 = vector.extract_strided_slice %175 {offsets = [0, 24], sizes = [16, 8], strides = [1, 1]} : vector<16x32xf32> to vector<16x8xf32>
    %227 = vector.extract_strided_slice %176 {offsets = [0, 24], sizes = [16, 8], strides = [1, 1]} : vector<16x32xf32> to vector<16x8xf32>
    %228 = vector.extract_strided_slice %177 {offsets = [0, 24], sizes = [16, 8], strides = [1, 1]} : vector<16x32xf32> to vector<16x8xf32>
    %cst_92 = arith.constant dense<0.000000e+00> : vector<16x16xf32>
    %229 = tpu.matmul %226, %227, %cst_92 {dimension_numbers = #tpu.dot_dimension_numbers<[1], [1], [0], [0], [0, 0, 1, 0], [], []>} : vector<16x8xf32>, vector<16x8xf32>, vector<16x16xf32> -> vector<16x16xf32>
    %230 = arith.addf %229, %10 : vector<16x16xf32>
    %cst_93 = arith.constant dense<0xFF800000> : vector<16xf32>
    %231 = vector.multi_reduction <maximumf>, %230, %cst_93 [1] : vector<16x16xf32> to vector<16xf32>
    %232 = vector.shape_cast %231 : vector<16xf32> to vector<16x1xf32>
    %233 = vector.broadcast %232 : vector<16x1xf32> to vector<16x16xf32>
    %234 = arith.subf %230, %233 : vector<16x16xf32>
    %235 = math.exp %234 : vector<16x16xf32>
    %cst_94 = arith.constant dense<0.000000e+00> : vector<16xf32>
    %236 = vector.multi_reduction <add>, %235, %cst_94 [1] : vector<16x16xf32> to vector<16xf32>
    %237 = vector.shape_cast %236 : vector<16xf32> to vector<16x1xf32>
    %238 = tpu.reciprocal %237 {approx = true} : vector<16x1xf32> -> vector<16x1xf32>
    %239 = vector.broadcast %238 : vector<16x1xf32> to vector<16x16xf32>
    %240 = arith.mulf %235, %239 : vector<16x16xf32>
    %cst_95 = arith.constant dense<0.000000e+00> : vector<16x8xf32>
    %241 = tpu.matmul %240, %228, %cst_95 {dimension_numbers = #tpu.dot_dimension_numbers<[1], [0], [0], [1], [0, 0, 1, 1], [], []>} : vector<16x16xf32>, vector<16x8xf32>, vector<16x8xf32> -> vector<16x8xf32>
    %242 = tpu.concatenate %193, %209, %225, %241 in 1 : vector<16x8xf32>, vector<16x8xf32>, vector<16x8xf32>, vector<16x8xf32> -> vector<16x32xf32>
    %243 = arith.truncf %242 : vector<16x32xf32> to vector<16x32xbf16>
    %c1_96 = arith.constant 1 : index
    %c0_97 = arith.constant 0 : index
    %c0_98 = arith.constant 0 : index
    %244 = vector.load %arg6[%c1_96, %c0_97, %c0_98] : memref<2x32x32xbf16, #tpu.memory_space<vmem>>, vector<1x32x32xbf16>
    %245 = vector.shape_cast %244 : vector<1x32x32xbf16> to vector<32x32xbf16>
    %cst_99 = arith.constant dense<0.000000e+00> : vector<16x32xf32>
    %246 = tpu.matmul %243, %245, %cst_99 {dimension_numbers = #tpu.dot_dimension_numbers<[1], [0], [0], [1], [0, 0, 1, 1], [], []>} : vector<16x32xbf16>, vector<32x32xbf16>, vector<16x32xf32> -> vector<16x32xf32>
    %c1_100 = arith.constant 1 : index
    %c0_101 = arith.constant 0 : index
    %c0_102 = arith.constant 0 : index
    %247 = vector.load %arg7[%c1_100, %c0_101, %c0_102] : memref<2x1x32xf32, #tpu.memory_space<vmem>>, vector<1x1x32xf32>
    %248 = vector.shape_cast %247 : vector<1x1x32xf32> to vector<1x32xf32>
    %249 = vector.broadcast %248 : vector<1x32xf32> to vector<16x32xf32>
    %250 = arith.addf %246, %249 : vector<16x32xf32>
    %251 = arith.addf %166, %250 : vector<16x32xf32>
    %c1_103 = arith.constant 1 : index
    %c0_104 = arith.constant 0 : index
    %c0_105 = arith.constant 0 : index
    %252 = vector.load %arg12[%c1_103, %c0_104, %c0_105] : memref<2x1x32xf32, #tpu.memory_space<vmem>>, vector<1x1x32xf32>
    %253 = vector.shape_cast %252 : vector<1x1x32xf32> to vector<1x32xf32>
    %c1_106 = arith.constant 1 : index
    %c0_107 = arith.constant 0 : index
    %c0_108 = arith.constant 0 : index
    %254 = vector.load %arg13[%c1_106, %c0_107, %c0_108] : memref<2x1x32xf32, #tpu.memory_space<vmem>>, vector<1x1x32xf32>
    %255 = vector.shape_cast %254 : vector<1x1x32xf32> to vector<1x32xf32>
    %cst_109 = arith.constant dense<0.000000e+00> : vector<16xf32>
    %256 = vector.multi_reduction <add>, %251, %cst_109 [1] : vector<16x32xf32> to vector<16xf32>
    %257 = vector.shape_cast %256 : vector<16xf32> to vector<16x1xf32>
    %cst_110 = arith.constant 3.200000e+01 : f32
    %258 = vector.broadcast %cst_110 : f32 to vector<16x1xf32>
    %259 = arith.divf %257, %258 : vector<16x1xf32>
    %260 = vector.broadcast %259 : vector<16x1xf32> to vector<16x32xf32>
    %261 = arith.subf %251, %260 : vector<16x32xf32>
    %262 = arith.mulf %261, %261 : vector<16x32xf32>
    %cst_111 = arith.constant dense<0.000000e+00> : vector<16xf32>
    %263 = vector.multi_reduction <add>, %262, %cst_111 [1] : vector<16x32xf32> to vector<16xf32>
    %264 = vector.shape_cast %263 : vector<16xf32> to vector<16x1xf32>
    %cst_112 = arith.constant 3.200000e+01 : f32
    %265 = vector.broadcast %cst_112 : f32 to vector<16x1xf32>
    %266 = arith.divf %264, %265 : vector<16x1xf32>
    %267 = vector.broadcast %259 : vector<16x1xf32> to vector<16x32xf32>
    %268 = arith.subf %251, %267 : vector<16x32xf32>
    %cst_113 = arith.constant 9.99999974E-6 : f32
    %269 = vector.broadcast %cst_113 : f32 to vector<16x1xf32>
    %270 = arith.addf %266, %269 : vector<16x1xf32>
    %271 = math.rsqrt %270 : vector<16x1xf32>
    %272 = vector.broadcast %271 : vector<16x1xf32> to vector<16x32xf32>
    %273 = arith.mulf %268, %272 : vector<16x32xf32>
    %274 = vector.broadcast %253 : vector<1x32xf32> to vector<16x32xf32>
    %275 = arith.mulf %273, %274 : vector<16x32xf32>
    %276 = vector.broadcast %255 : vector<1x32xf32> to vector<16x32xf32>
    %277 = arith.addf %275, %276 : vector<16x32xf32>
    %278 = arith.truncf %277 : vector<16x32xf32> to vector<16x32xbf16>
    %c1_114 = arith.constant 1 : index
    %c0_115 = arith.constant 0 : index
    %c0_116 = arith.constant 0 : index
    %279 = vector.load %arg8[%c1_114, %c0_115, %c0_116] : memref<2x32x64xbf16, #tpu.memory_space<vmem>>, vector<1x32x64xbf16>
    %280 = vector.shape_cast %279 : vector<1x32x64xbf16> to vector<32x64xbf16>
    %cst_117 = arith.constant dense<0.000000e+00> : vector<16x64xf32>
    %281 = tpu.matmul %278, %280, %cst_117 {dimension_numbers = #tpu.dot_dimension_numbers<[1], [0], [0], [1], [0, 0, 1, 1], [], []>} : vector<16x32xbf16>, vector<32x64xbf16>, vector<16x64xf32> -> vector<16x64xf32>
    %c1_118 = arith.constant 1 : index
    %c0_119 = arith.constant 0 : index
    %c0_120 = arith.constant 0 : index
    %282 = vector.load %arg9[%c1_118, %c0_119, %c0_120] : memref<2x1x64xf32, #tpu.memory_space<vmem>>, vector<1x1x64xf32>
    %283 = vector.shape_cast %282 : vector<1x1x64xf32> to vector<1x64xf32>
    %284 = vector.broadcast %283 : vector<1x64xf32> to vector<16x64xf32>
    %285 = arith.addf %281, %284 : vector<16x64xf32>
    %cst_121 = arith.constant 0.000000e+00 : f32
    %286 = vector.broadcast %cst_121 : f32 to vector<16x64xf32>
    %287 = arith.maximumf %285, %286 : vector<16x64xf32>
    %288 = arith.truncf %287 : vector<16x64xf32> to vector<16x64xbf16>
    %c1_122 = arith.constant 1 : index
    %c0_123 = arith.constant 0 : index
    %c0_124 = arith.constant 0 : index
    %289 = vector.load %arg10[%c1_122, %c0_123, %c0_124] : memref<2x64x32xbf16, #tpu.memory_space<vmem>>, vector<1x64x32xbf16>
    %290 = vector.shape_cast %289 : vector<1x64x32xbf16> to vector<64x32xbf16>
    %cst_125 = arith.constant dense<0.000000e+00> : vector<16x32xf32>
    %291 = tpu.matmul %288, %290, %cst_125 {dimension_numbers = #tpu.dot_dimension_numbers<[1], [0], [0], [1], [0, 0, 1, 1], [], []>} : vector<16x64xbf16>, vector<64x32xbf16>, vector<16x32xf32> -> vector<16x32xf32>
    %c1_126 = arith.constant 1 : index
    %c0_127 = arith.constant 0 : index
    %c0_128 = arith.constant 0 : index
    %292 = vector.load %arg11[%c1_126, %c0_127, %c0_128] : memref<2x1x32xf32, #tpu.memory_space<vmem>>, vector<1x1x32xf32>
    %293 = vector.shape_cast %292 : vector<1x1x32xf32> to vector<1x32xf32>
    %294 = vector.broadcast %293 : vector<1x32xf32> to vector<16x32xf32>
    %295 = arith.addf %291, %294 : vector<16x32xf32>
    %296 = arith.addf %277, %295 : vector<16x32xf32>
    %c1_129 = arith.constant 1 : index
    %c0_130 = arith.constant 0 : index
    %c0_131 = arith.constant 0 : index
    %297 = vector.load %arg14[%c1_129, %c0_130, %c0_131] : memref<2x1x32xf32, #tpu.memory_space<vmem>>, vector<1x1x32xf32>
    %298 = vector.shape_cast %297 : vector<1x1x32xf32> to vector<1x32xf32>
    %c1_132 = arith.constant 1 : index
    %c0_133 = arith.constant 0 : index
    %c0_134 = arith.constant 0 : index
    %299 = vector.load %arg15[%c1_132, %c0_133, %c0_134] : memref<2x1x32xf32, #tpu.memory_space<vmem>>, vector<1x1x32xf32>
    %300 = vector.shape_cast %299 : vector<1x1x32xf32> to vector<1x32xf32>
    %cst_135 = arith.constant dense<0.000000e+00> : vector<16xf32>
    %301 = vector.multi_reduction <add>, %296, %cst_135 [1] : vector<16x32xf32> to vector<16xf32>
    %302 = vector.shape_cast %301 : vector<16xf32> to vector<16x1xf32>
    %cst_136 = arith.constant 3.200000e+01 : f32
    %303 = vector.broadcast %cst_136 : f32 to vector<16x1xf32>
    %304 = arith.divf %302, %303 : vector<16x1xf32>
    %305 = vector.broadcast %304 : vector<16x1xf32> to vector<16x32xf32>
    %306 = arith.subf %296, %305 : vector<16x32xf32>
    %307 = arith.mulf %306, %306 : vector<16x32xf32>
    %cst_137 = arith.constant dense<0.000000e+00> : vector<16xf32>
    %308 = vector.multi_reduction <add>, %307, %cst_137 [1] : vector<16x32xf32> to vector<16xf32>
    %309 = vector.shape_cast %308 : vector<16xf32> to vector<16x1xf32>
    %cst_138 = arith.constant 3.200000e+01 : f32
    %310 = vector.broadcast %cst_138 : f32 to vector<16x1xf32>
    %311 = arith.divf %309, %310 : vector<16x1xf32>
    %312 = vector.broadcast %304 : vector<16x1xf32> to vector<16x32xf32>
    %313 = arith.subf %296, %312 : vector<16x32xf32>
    %cst_139 = arith.constant 9.99999974E-6 : f32
    %314 = vector.broadcast %cst_139 : f32 to vector<16x1xf32>
    %315 = arith.addf %311, %314 : vector<16x1xf32>
    %316 = math.rsqrt %315 : vector<16x1xf32>
    %317 = vector.broadcast %316 : vector<16x1xf32> to vector<16x32xf32>
    %318 = arith.mulf %313, %317 : vector<16x32xf32>
    %319 = vector.broadcast %298 : vector<1x32xf32> to vector<16x32xf32>
    %320 = arith.mulf %318, %319 : vector<16x32xf32>
    %321 = vector.broadcast %300 : vector<1x32xf32> to vector<16x32xf32>
    %322 = arith.addf %320, %321 : vector<16x32xf32>
    %c0_140 = arith.constant 0 : index
    %c0_141 = arith.constant 0 : index
    %323 = vector.load %arg16[%c0_140, %c0_141] : memref<1x32xf32, #tpu.memory_space<vmem>>, vector<1x32xf32>
    %c0_142 = arith.constant 0 : index
    %c0_143 = arith.constant 0 : index
    %324 = vector.load %arg17[%c0_142, %c0_143] : memref<1x32xf32, #tpu.memory_space<vmem>>, vector<1x32xf32>
    %cst_144 = arith.constant dense<0.000000e+00> : vector<16xf32>
    %325 = vector.multi_reduction <add>, %322, %cst_144 [1] : vector<16x32xf32> to vector<16xf32>
    %326 = vector.shape_cast %325 : vector<16xf32> to vector<16x1xf32>
    %cst_145 = arith.constant 3.200000e+01 : f32
    %327 = vector.broadcast %cst_145 : f32 to vector<16x1xf32>
    %328 = arith.divf %326, %327 : vector<16x1xf32>
    %329 = vector.broadcast %328 : vector<16x1xf32> to vector<16x32xf32>
    %330 = arith.subf %322, %329 : vector<16x32xf32>
    %331 = arith.mulf %330, %330 : vector<16x32xf32>
    %cst_146 = arith.constant dense<0.000000e+00> : vector<16xf32>
    %332 = vector.multi_reduction <add>, %331, %cst_146 [1] : vector<16x32xf32> to vector<16xf32>
    %333 = vector.shape_cast %332 : vector<16xf32> to vector<16x1xf32>
    %cst_147 = arith.constant 3.200000e+01 : f32
    %334 = vector.broadcast %cst_147 : f32 to vector<16x1xf32>
    %335 = arith.divf %333, %334 : vector<16x1xf32>
    %336 = vector.broadcast %328 : vector<16x1xf32> to vector<16x32xf32>
    %337 = arith.subf %322, %336 : vector<16x32xf32>
    %cst_148 = arith.constant 9.99999974E-6 : f32
    %338 = vector.broadcast %cst_148 : f32 to vector<16x1xf32>
    %339 = arith.addf %335, %338 : vector<16x1xf32>
    %340 = math.rsqrt %339 : vector<16x1xf32>
    %341 = vector.broadcast %340 : vector<16x1xf32> to vector<16x32xf32>
    %342 = arith.mulf %337, %341 : vector<16x32xf32>
    %343 = vector.broadcast %323 : vector<1x32xf32> to vector<16x32xf32>
    %344 = arith.mulf %342, %343 : vector<16x32xf32>
    %345 = vector.broadcast %324 : vector<1x32xf32> to vector<16x32xf32>
    %346 = arith.addf %344, %345 : vector<16x32xf32>
    %c0_149 = arith.constant 0 : index
    %c0_150 = arith.constant 0 : index
    %347 = vector.load %arg18[%c0_149, %c0_150] : memref<1x32xf32, #tpu.memory_space<vmem>>, vector<1x32xf32>
    %cst_151 = arith.constant dense<0.000000e+00> : vector<1x16xf32>
    %348 = tpu.matmul %347, %346, %cst_151 {dimension_numbers = #tpu.dot_dimension_numbers<[1], [1], [0], [0], [0, 0, 1, 0], [], []>} : vector<1x32xf32>, vector<16x32xf32>, vector<1x16xf32> -> vector<1x16xf32>
    %c0_152 = arith.constant 0 : index
    %c0_153 = arith.constant 0 : index
    %349 = vector.load %arg19[%c0_152, %c0_153] : memref<1x1xf32, #tpu.memory_space<vmem>>, vector<1x1xf32>
    %350 = vector.broadcast %349 : vector<1x1xf32> to vector<1x16xf32>
    %351 = arith.addf %348, %350 : vector<1x16xf32>
    %352 = vector.extract_strided_slice %351 {offsets = [0, 0], sizes = [1, 8], strides = [1, 1]} : vector<1x16xf32> to vector<1x8xf32>
    %353 = vector.shape_cast %352 : vector<1x8xf32> to vector<1x8xf32>
    %354 = vector.broadcast %353 : vector<1x8xf32> to vector<8x8xf32>
    %355 = vector.extract_strided_slice %351 {offsets = [0, 8], sizes = [1, 8], strides = [1, 1]} : vector<1x16xf32> to vector<1x8xf32>
    %356 = vector.shape_cast %355 : vector<1x8xf32> to vector<1x8xf32>
    %357 = vector.broadcast %356 : vector<1x8xf32> to vector<8x8xf32>
    %358 = vector.shape_cast %354 : vector<8x8xf32> to vector<1x8x8xf32>
    %359 = vector.shape_cast %357 : vector<8x8xf32> to vector<1x8x8xf32>
    %360 = tpu.concatenate %358, %359 in 0 : vector<1x8x8xf32>, vector<1x8x8xf32> -> vector<2x8x8xf32>
    %c0_154 = arith.constant 0 : index
    %c0_155 = arith.constant 0 : index
    %c0_156 = arith.constant 0 : index
    %361 = vector.load %arg20[%c0_154, %c0_155, %c0_156] : memref<2x8x8xf32, #tpu.memory_space<vmem>>, vector<2x8x8xf32>
    tpu.vector_store %arg20[%c0_154, %c0_155, %c0_156], %360 {strides = array<i32>} : memref<2x8x8xf32, #tpu.memory_space<vmem>>, vector<2x8x8xf32>,
    return
  }
}

</mosaic_0001>

<bundles_post_ra>
// kernel: tpu_custom_call.1
= control target key start
LH: loop header
LB: loop body
LE: loop exit
PB: predicated region body
PF: predicated region fallthrough
CT: control target
= control target key end

     0   :  { %s2672_s0 = inlined_call_operand.vmem [shape: s32[16,1], index: 0, kind: input, shape index: {}]   ;;  %s2673_s1 = inlined_call_operand.vmem [shape: f32[64,32], index: 1, kind: input, shape index: {}]   ;;  %s2674_s2 = inlined_call_operand.vmem [shape: f32[16,32], index: 2, kind: input, shape index: {}]   ;;  %s2675_s3 = inlined_call_operand.vmem [shape: f32[16,16], index: 3, kind: input, shape index: {}]   ;;  %s2676_s4 = inlined_call_operand.vmem [shape: bf16[2,32,96], index: 4, kind: input, shape index: {}]   ;;  %s2677_s5 = inlined_call_operand.vmem [shape: f32[2,1,96], index: 5, kind: input, shape index: {}]   ;;  %s2678_s6 = inlined_call_operand.vmem [shape: bf16[2,32,32], index: 6, kind: input, shape index: {}]   ;;  %s2679_s7 = inlined_call_operand.vmem [shape: f32[2,1,32], index: 7, kind: input, shape index: {}]   ;;  %s2680_s8 = inlined_call_operand.vmem [shape: bf16[2,32,64], index: 8, kind: input, shape index: {}]   ;;  %s2681_s9 = inlined_call_operand.vmem [shape: f32[2,1,64], index: 9, kind: input, shape index: {}]   ;;  %s2682_s10 = inlined_call_operand.vmem [shape: bf16[2,64,32], index: 10, kind: input, shape index: {}]   ;;  %s2683_s11 = inlined_call_operand.vmem [shape: f32[2,1,32], index: 11, kind: input, shape index: {}]   ;;  %s2684_s12 = inlined_call_operand.vmem [shape: f32[2,1,32], index: 12, kind: input, shape index: {}]   ;;  %s2685_s13 = inlined_call_operand.vmem [shape: f32[2,1,32], index: 13, kind: input, shape index: {}]   ;;  %s2686_s14 = inlined_call_operand.vmem [shape: f32[2,1,32], index: 14, kind: input, shape index: {}]   ;;  %s2687_s15 = inlined_call_operand.vmem [shape: f32[2,1,32], index: 15, kind: input, shape index: {}]   ;;  %s2688_s16 = inlined_call_operand.vmem [shape: f32[1,32], index: 16, kind: input, shape index: {}]   ;;  %s2689_s17 = inlined_call_operand.vmem [shape: f32[1,32], index: 17, kind: input, shape index: {}]   ;;  %s2690_s18 = inlined_call_operand.vmem [shape: f32[1,32], index: 18, kind: input, shape index: {}]   ;;  %s2691_s19 = inlined_call_operand.<no memory space> [shape: f32[1,1], index: 19, kind: input, shape index: {}]   ;;  %s2692_s20 = inlined_call_operand.hbm [shape: f32[2,8,8], index: 20, kind: output, shape index: {}]  }
   0x1   :  { %2708 = sst [smem:[#allocation6_spill]] %s2672_s0  ;;  %v25_v0 = vstv %s2691_s19 }
   0x2   :  { %2709 = sst [smem:[#allocation7_spill]] %s2673_s1  ;;  %26 = vst [vmem:[#allocation2] sm:$0x1] %v25_v0 }
   0x3   :  { %2710 = sst [smem:[#allocation8_spill]] %s2674_s2 }
   0x4   :  { %2711 = sst [smem:[#allocation9_spill]] %s2675_s3 }
   0x5   :  { %2712 = sst [smem:[#allocation10_spill]] %s2676_s4 }
   0x6   :  { %s2713_s2 = sld [smem:[#allocation6_spill]]  ;;  %v2078_v3 = vmov 0  }
   0x7   :  { %s2714_s26 = sld [smem:[#allocation7_spill]]  ;;  %1876 = vset.pattern.permute.xlu0 %v2078_v3  ;;  %1947 = vset.pattern.permute.xlu1 %v2078_v3 }
   0xc   :  { %v69_v1 = vld [vmem:[%s2713_s2] sm:$0xff]  ;;  %v70_v8 = vld [vmem:[%s2713_s2 + $0x8] sm:$0xff] }
   0xd   :  { %v92_v2 = vld [vmem:[%s2714_s26 + $0x38] sm:$0xff]  ;;  %v91_v4 = vld [vmem:[%s2714_s26 + $0x30] sm:$0xff]  ;;  %74 = vperm.xlu0 %1876, %v69_v1   ;;  %v90_v5 = vld [vmem:[%s2714_s26 + $0x28] sm:$0xff] }
   0xe   :  { %110 = vmatpush.msra.mxu0 %v92_v2  ;;  %v89_v6 = vld [vmem:[%s2714_s26 + $0x20] sm:$0xff]  ;;  %v88_v7 = vld [vmem:[%s2714_s26 + $0x18] sm:$0xff]  ;;  %v87_v9 = vld [vmem:[%s2714_s26 + $0x10] sm:$0xff] }
  0x10   :  { %111 = vmatpush.msra.mxu0 %v91_v4 }
  0x12   :  { %112 = vmatpush.msra.mxu0 %v90_v5 }
  0x14   :  { %113 = vmatpush.msra.mxu0 %v89_v6 }
  0x16   :  { %114 = vmatpush.msra.mxu0 %v88_v7 }
  0x17   :  { %27 = vsyncpa [#allocation4], 0  ;;  %77 = vperm.xlu0 %1876, %v70_v8   ;;  %v86_v10 = vld [vmem:[%s2714_s26 + $0x8] sm:$0xff]  ;;  %v85_v11 = vld [vmem:[%s2714_s26] sm:$0xff]  ;;  %v71_v12 = vlaneseq  ;;  %vm95_vm0 = vcmask 523264   ;;  %v2079_v15 = vmov 0.0  }
  0x18   :  { %115 = vmatpush.msra.mxu0 %v87_v9  ;;  %s2715_s29 = sld [smem:[#allocation10_spill]]  ;;  %vm148_vm3 = vcmask 261120   ;;  %v1948_v29 = vld [vmem:[%s2677_s5] ss:$0 sm:$0xff]  ;;  %s2080_s25 = smov 80   ;;  %vm172_vm4 = vcmask 64512  }
  0x19   :  { %v72_v13 = vand.u32 127, %v71_v12  ;;  %s2716_s21 = sld [smem:[#allocation8_spill]]  ;;  %s2081_s3 = smov 96   ;;  %vm204_vm5 = vcmask 130048   ;;  %vm578_vm6 = vcmask 195584  }
  0x1a   :  { %116 = vmatpush.msra.mxu0 %v86_v10  ;;  %s2706_s27 = smov 112   ;;  %s2705_s28 = smov 64  }
  0x1b   :  { %s2717_s26 = sld [smem:[#allocation9_spill]]  ;;  %s2084_s0 = smov 88  }
  0x1c   :  { %117 = vmatpush.msra.mxu0 %v85_v11  ;;  %s2086_s1 = smov 72   ;;  %s2087_s22 = smov 104  }
  0x1d   :  { %s2700_s23 = smov 56   ;;  %s2698_s24 = smov 40  }
  0x1e   :  { %v1836_v19 = vld [vmem:[%s2715_s29 + $0x8] sm:$0xff]  ;;  %v1835_v20 = vld [vmem:[%s2715_s29] sm:$0xff]  ;;  %s2699_s2 = smov 48   ;;  %s2703_s4 = smov 8  }
  0x1f   :  { %158 = vmatpush.bf16.msra.mxu1 %v1836_v19  ;;  %v93_v22 = vld [vmem:[%s2716_s21] sm:$0xff]  ;;  %v94_v23 = vld [vmem:[%s2716_s21 + $0x8] sm:$0xff]  ;;  %s2085_s21 = smov 120   ;;  %s2701_s19 = smov 24  }
  0x21   :  { %v2287_v40 = vld [vmem:[%s2717_s26] sm:$0xff]  ;;  %v2294_v44 = vld [vmem:[%s2717_s26 + $0x8] sm:$0xff]  ;;  %s2702_s26 = smov 16  }
  0x23   :  { %159 = vmatpush.bf16.msra.mxu1 %v1835_v20 }
  0x7f   :  { %v75_v14 = vpop.permute.xlu0 %74 }
  0x80   :  { %vm79_vm1 = vcmp.eq.s32.totalorder %v72_v13, %v75_v14 }
  0x81   :  { %v1664_v16 = vsel %vm79_vm1, 1.0, %v2079_v15 }
  0x82   :  { %1666 = vmatmul.msk.f32.vlgmr.msra.gmra.mxu0 %vm95_vm0, %v1664_v16 }
  0x89   :  { %v78_v17 = vpop.permute.xlu0 %77 }
  0x8a   :  { %vm80_vm2 = vcmp.eq.s32.totalorder %v72_v13, %v78_v17 }
  0x8b   :  { %v1665_v18 = vsel %vm80_vm2, 1.0, %v2079_v15 }
  0x8c   :  { %1667 = vmatmul.msk.f32.gmra.mxu0 %vm95_vm0, %v1665_v18 }
  0xff   :  { %v119_v21 = vpop.f32.mrf.mxu0 }
 0x100   :  { %v2249_v25 = vadd.f32 %v119_v21, %v93_v22 }
 0x109   :  { %v122_v24 = vpop.f32.mrf.mxu0 }
 0x10a   :  { %v2251_v26 = vadd.f32 %v122_v24, %v94_v23 }
 0x10c   :  { %v127_v27 = vpack.c.bf16 %v2251_v26, %v2249_v25 }
 0x10e   :  { %1676 = vmatmul.msk.bf16.vlgmr.msra.gmra.mxu1 %vm148_vm3, %v127_v27 }
 0x18b   :  { %v161_v28 = vpop.f32.mrf.mxu1 }
 0x18c   :  { %v2265_v32 = vadd.f32 %v1948_v29, %v161_v28 }
 0x193   :  { %v163_v30 = vpop.f32.mrf.mxu1 }
 0x194   :  { %v2259_v31 = vadd.f32 %v1948_v29, %v163_v30 }
 0x196   :  { %364 = vrot.lane.b32.xlu0 %v2259_v31, %s2080_s25  ;;  %170 = vrot.lane.b32.xlu1 %v2259_v31, %s2081_s3  ;;  %v2273_v33 = vpack.i.bf16 %v2265_v32, %v2259_v31 }
 0x19e   :  { %358 = vrot.lane.b32.xlu0 %v2265_v32, %s2706_s27  ;;  %168 = vrot.lane.b32.xlu1 %v2265_v32, %s2081_s3 }
 0x1a6   :  { %1878 = vrot.lane.b32.xlu1 %v2273_v33, %s2705_s28  ;;  %s2725_s28 = smov 24  }
 0x208   :  { %v171_v34 = vpop.permute.xlu1 %170  ;;  %v365_v39 = vpop.permute.xlu0 %364 }
 0x209   :  { %1677 = vmatpush.xpose.msk.msra.mxu2 %vm172_vm4, %v171_v34 }
 0x210   :  { %v169_v35 = vpop.permute.xlu1 %168  ;;  %v359_v61 = vpop.permute.xlu0 %358 }
 0x211   :  { %1678 = vmatpush.xpose.msk.msra.mxu2 %vm172_vm4, %v169_v35 }
 0x214   :  { %1679 = vmatmul.msk.f32.vlgmr.msra.gmra.mxu2 %vm172_vm4, %v2265_v32 }
 0x218   :  { %v1879_v36 = vpop.permute.xlu1 %1878 }
 0x219   :  { %v1880_v37 = vunpack.i.l.bf16 %v1879_v36  ;;  %v1881_v38 = vunpack.i.h.bf16 %v1879_v36 }
 0x21b   :  { %253 = vmatpush.msrb.mxu2 %v1880_v37  ;;  %1855 = vmatpush.msra.mxu3 %v1880_v37 }
 0x21c   :  { %1680 = vmatmul.msk.f32.gmra.mxu2 %vm172_vm4, %v2259_v31 }
 0x21d   :  { %254 = vmatpush.msrb.mxu2 %v1881_v38  ;;  %1856 = vmatpush.msra.mxu3 %v1881_v38 }
 0x21f   :  { %1689 = vmatpush.xpose.msk.msra.mxu2 %vm172_vm4, %v365_v39 }
 0x297   :  { %v198_v41 = vpop.f32.mrf.mxu2 }
 0x298   :  { %v199_v42 = vadd.f32 %v198_v41, %v2287_v40 }
 0x29a   :  { %v205_v43 = vsel %vm204_vm5, %v199_v42, -inf }
 0x29b   :  { %206 = vmax.xlane.f32.xlu2 %v205_v43 }
 0x29f   :  { %v201_v45 = vpop.f32.mrf.mxu2 }
 0x2a0   :  { %v202_v46 = vadd.f32 %v201_v45, %v2294_v44 }
 0x2a2   :  { %v208_v47 = vsel %vm204_vm5, %v202_v46, -inf }
 0x2a3   :  { %209 = vmax.xlane.f32.xlu2 %v208_v47 }
 0x2bb   :  { %268 = vrot.lane.b32.xlu2 %v2259_v31, %s2084_s0 }
 0x2c3   :  { %266 = vrot.lane.b32.xlu2 %v2265_v32, %s2084_s0 }
 0x2cb   :  { %262 = vrot.lane.b32.xlu2 %v2265_v32, %s2085_s21 }
 0x2d3   :  { %264 = vrot.lane.b32.xlu2 %v2259_v31, %s2085_s21 }
 0x2db   :  { %460 = vrot.lane.b32.xlu2 %v2259_v31, %s2086_s1 }
 0x2e3   :  { %458 = vrot.lane.b32.xlu2 %v2265_v32, %s2086_s1 }
 0x2eb   :  { %454 = vrot.lane.b32.xlu2 %v2265_v32, %s2087_s22 }
 0x2f3   :  { %456 = vrot.lane.b32.xlu2 %v2259_v31, %s2087_s22 }
 0x30e   :  { %v207_v48 = vpop.xlane.xlu2 %206 }
 0x30f   :  { %v211_v49 = vsub.f32 %v199_v42, %v207_v48 }
 0x311   :  { %v213_v50 = vmul.f32 1.442695, %v211_v49 }
 0x313   :  { %1966 = vpow2.f32 %v213_v50 }
 0x316   :  { %v210_v51 = vpop.xlane.xlu2 %209 }
 0x317   :  { %v212_v52 = vsub.f32 %v202_v46, %v210_v51 }
 0x319   :  { %v1967_v53 = vpop.eup %1966  ;;  %v215_v54 = vmul.f32 1.442695, %v212_v52 }
 0x31a   :  { %v217_v55 = vsel %vm204_vm5, %v1967_v53, 0.0 }
 0x31b   :  { %1968 = vpow2.f32 %v215_v54  ;;  %218 = vadd.xlane.f32.xlu1 %v217_v55 }
 0x31e   :  { %v269_v56 = vpop.permute.xlu2 %268 }
 0x31f   :  { %1683 = vmatpush.xpose.msk.msrb.mxu3 %vm172_vm4, %v269_v56 }
 0x321   :  { %v1969_v57 = vpop.eup %1968 }
 0x322   :  { %v220_v58 = vsel %vm204_vm5, %v1969_v57, 0.0 }
 0x323   :  { %221 = vadd.xlane.f32.xlu0 %v220_v58 }
 0x326   :  { %v267_v59 = vpop.permute.xlu2 %266 }
 0x327   :  { %1684 = vmatpush.xpose.msk.msrb.mxu3 %vm172_vm4, %v267_v59 }
 0x32e   :  { %v263_v60 = vpop.permute.xlu2 %262 }
 0x334   :  { %362 = vrot.lane.b32.xlu1 %v2265_v32, %s2080_s25 }
 0x336   :  { %v265_v63 = vpop.permute.xlu2 %264 }
 0x337   :  { %360 = vrot.lane.b32.xlu0 %v2259_v31, %s2706_s27  ;;  %s2724_s27 = smov 16  }
 0x33e   :  { %v461_v3 = vpop.permute.xlu2 %460 }
 0x346   :  { %v459_v6 = vpop.permute.xlu2 %458 }
 0x34e   :  { %v455_v9 = vpop.permute.xlu2 %454 }
 0x356   :  { %v457_v10 = vpop.permute.xlu2 %456 }
 0x38e   :  { %v219_v62 = vpop.xlane.xlu1 %218 }
 0x38f   :  { %1970 = vrcp.f32 %v219_v62 }
 0x395   :  { %v1971_v0 = vpop.eup %1970 }
 0x396   :  { %v222_v1 = vpop.xlane.xlu0 %221  ;;  %v225_v2 = vmul.f32 %v1971_v0, %v1967_v53 }
 0x397   :  { %1972 = vrcp.f32 %v222_v1 }
 0x398   :  { %1681 = vmatmul.msk.f32.vlgmr.msrb.gmra.mxu2 %vm204_vm5, %v225_v2 }
 0x39d   :  { %v1973_v4 = vpop.eup %1972 }
 0x39e   :  { %v226_v5 = vmul.f32 %v1973_v4, %v1969_v57 }
 0x3a0   :  { %1682 = vmatmul.msk.f32.vlgmr.msra.gmra.mxu3 %vm204_vm5, %v226_v5 }
 0x3a1   :  { %1695 = vmatpush.xpose.msk.msra.mxu3 %vm172_vm4, %v461_v3 }
 0x3a5   :  { %1696 = vmatpush.xpose.msk.msra.mxu3 %vm172_vm4, %v459_v6 }
 0x3a6   :  { %v363_v7 = vpop.permute.xlu1 %362 }
 0x3a7   :  { %1690 = vmatpush.xpose.msk.msra.mxu2 %vm172_vm4, %v363_v7 }
 0x3a8   :  { %1685 = vmatmul.msk.f32.vlgmr.msrb.gmra.mxu3 %vm172_vm4, %v263_v60 }
 0x3a9   :  { %v361_v8 = vpop.permute.xlu0 %360 }
 0x3aa   :  { %1691 = vmatmul.msk.f32.vlgmr.msra.gmra.mxu2 %vm172_vm4, %v359_v61 }
 0x3b0   :  { %1686 = vmatmul.msk.f32.gmra.mxu3 %vm172_vm4, %v265_v63 }
 0x3b2   :  { %1692 = vmatmul.msk.f32.gmra.mxu2 %vm172_vm4, %v361_v8 }
 0x3b8   :  { %1697 = vmatmul.msk.f32.vlgmr.msra.gmra.mxu3 %vm172_vm4, %v455_v9 }
 0x3c0   :  { %1698 = vmatmul.msk.f32.gmra.mxu3 %vm172_vm4, %v457_v10 }
 0x41b   :  { %v2335_v12 = vpop.f32.mrf.mxu2 }
 0x423   :  { %v2333_v11 = vpop.f32.mrf.mxu3 }
 0x42b   :  { %v295_v13 = vpop.f32.mrf.mxu3 }
 0x42c   :  { %v296_v14 = vadd.f32 %v295_v13, %v2287_v40 }
 0x42d   :  { %v391_v15 = vpop.f32.mrf.mxu2 }
 0x42e   :  { %v392_v16 = vadd.f32 %v391_v15, %v2287_v40  ;;  %v301_v17 = vsel %vm204_vm5, %v296_v14, -inf }
 0x42f   :  { %302 = vmax.xlane.f32.xlu1 %v301_v17 }
 0x430   :  { %v397_v18 = vsel %vm204_vm5, %v392_v16, -inf }
 0x431   :  { %398 = vmax.xlane.f32.xlu2 %v397_v18 }
 0x433   :  { %v298_v19 = vpop.f32.mrf.mxu3 }
 0x434   :  { %v299_v20 = vadd.f32 %v298_v19, %v2294_v44 }
 0x435   :  { %v394_v22 = vpop.f32.mrf.mxu2 }
 0x436   :  { %v304_v21 = vsel %vm204_vm5, %v299_v20, -inf  ;;  %v395_v23 = vadd.f32 %v394_v22, %v2294_v44 }
 0x437   :  { %305 = vmax.xlane.f32.xlu0 %v304_v21 }
 0x438   :  { %v400_v29 = vsel %vm204_vm5, %v395_v23, -inf }
 0x43b   :  { %v487_v24 = vpop.f32.mrf.mxu3 }
 0x43c   :  { %v488_v27 = vadd.f32 %v487_v24, %v2287_v40 }
 0x43e   :  { %v493_v28 = vsel %vm204_vm5, %v488_v27, -inf }
 0x43f   :  { %494 = vmax.xlane.f32.xlu1 %v493_v28  ;;  %401 = vmax.xlane.f32.xlu0 %v400_v29 }
 0x443   :  { %v490_v30 = vpop.f32.mrf.mxu3 }
 0x444   :  { %v491_v31 = vadd.f32 %v490_v30, %v2294_v44 }
 0x446   :  { %v496_v32 = vsel %vm204_vm5, %v491_v31, -inf }
 0x447   :  { %497 = vmax.xlane.f32.xlu2 %v496_v32 }
 0x453   :  { %1883 = vrot.lane.b32.xlu0 %v2273_v33, %s2700_s23 }
 0x45b   :  { %1893 = vrot.lane.b32.xlu0 %v2273_v33, %s2698_s24 }
 0x4a2   :  { %v303_v34 = vpop.xlane.xlu1 %302 }
 0x4a3   :  { %v307_v37 = vsub.f32 %v296_v14, %v303_v34 }
 0x4a4   :  { %v399_v35 = vpop.xlane.xlu2 %398 }
 0x4a5   :  { %v403_v36 = vsub.f32 %v392_v16, %v399_v35  ;;  %v309_v41 = vmul.f32 1.442695, %v307_v37 }
 0x4a7   :  { %v405_v38 = vmul.f32 1.442695, %v403_v36 }
 0x4a9   :  { %1974 = vpow2.f32 %v405_v38 }
 0x4aa   :  { %v306_v39 = vpop.xlane.xlu0 %305  ;;  %1976 = vpow2.f32 %v309_v41 }
 0x4ab   :  { %v308_v49 = vsub.f32 %v299_v20, %v306_v39 }
 0x4ad   :  { %v311_v51 = vmul.f32 1.442695, %v308_v49 }
 0x4af   :  { %v2353_v42 = vpop.eup %1974 }
 0x4b0   :  { %v409_v43 = vsel %vm204_vm5, %v2353_v42, 0.0  ;;  %v1977_v47 = vpop.eup %1976 }
 0x4b1   :  { %410 = vadd.xlane.f32.xlu1 %v409_v43  ;;  %v313_v50 = vsel %vm204_vm5, %v1977_v47, 0.0  ;;  %v1838_v43 = vld [vmem:[%s2678_s6 + $0x8] sm:$0xff] }
 0x4b2   :  { %v402_v45 = vpop.xlane.xlu0 %401  ;;  %v495_v52 = vpop.xlane.xlu1 %494  ;;  %611 = vmatpush.bf16.msrb.mxu2 %v1838_v43 }
 0x4b3   :  { %v404_v46 = vsub.f32 %v395_v23, %v402_v45  ;;  %v499_v54 = vsub.f32 %v488_v27, %v495_v52  ;;  %v1837_v45 = vld [vmem:[%s2678_s6] sm:$0xff] }
 0x4b5   :  { %v407_v48 = vmul.f32 1.442695, %v404_v46  ;;  %v501_v56 = vmul.f32 1.442695, %v499_v54 }
 0x4b6   :  { %612 = vmatpush.bf16.msrb.mxu2 %v1837_v45 }
 0x4b7   :  { %1978 = vpow2.f32 %v407_v48 }
 0x4b8   :  { %1980 = vpow2.f32 %v311_v51 }
 0x4b9   :  { %314 = vadd.xlane.f32.xlu1 %v313_v50  ;;  %1982 = vpow2.f32 %v501_v56 }
 0x4ba   :  { %v498_v57 = vpop.xlane.xlu2 %497 }
 0x4bb   :  { %v500_v60 = vsub.f32 %v491_v31, %v498_v57 }
 0x4bd   :  { %v1979_v53 = vpop.eup %1978  ;;  %v503_v0 = vmul.f32 1.442695, %v500_v60 }
 0x4be   :  { %v412_v55 = vsel %vm204_vm5, %v1979_v53, 0.0  ;;  %v1981_v58 = vpop.eup %1980 }
 0x4bf   :  { %413 = vadd.xlane.f32.xlu2 %v412_v55  ;;  %v316_v62 = vsel %vm204_vm5, %v1981_v58, 0.0  ;;  %v1983_v1 = vpop.eup %1982  ;;  %1984 = vpow2.f32 %v503_v0 }
 0x4c0   :  { %v505_v4 = vsel %vm204_vm5, %v1983_v1, 0.0 }
 0x4c5   :  { %v1884_v59 = vpop.permute.xlu0 %1883  ;;  %v1985_v6 = vpop.eup %1984 }
 0x4c6   :  { %v1885_v61 = vunpack.i.l.bf16 %v1884_v59  ;;  %v1886_v63 = vunpack.i.h.bf16 %v1884_v59  ;;  %v508_v7 = vsel %vm204_vm5, %v1985_v6, 0.0 }
 0x4c7   :  { %317 = vadd.xlane.f32.xlu2 %v316_v62 }
 0x4c8   :  { %349 = vmatpush.msrb.mxu1 %v1885_v61 }
 0x4ca   :  { %350 = vmatpush.msrb.mxu1 %v1886_v63 }
 0x4cd   :  { %v1894_v2 = vpop.permute.xlu0 %1893 }
 0x4ce   :  { %v1895_v3 = vunpack.i.l.bf16 %v1894_v2  ;;  %v1896_v5 = vunpack.i.h.bf16 %v1894_v2 }
 0x4cf   :  { %506 = vadd.xlane.f32.xlu2 %v505_v4 }
 0x4d0   :  { %541 = vmatpush.msra.mxu1 %v1895_v3 }
 0x4d2   :  { %542 = vmatpush.msra.mxu1 %v1896_v5  ;;  %1888 = vrot.lane.b32.xlu1 %v2273_v33, %s2699_s2  ;;  %v2094_v5 = vmov 32.0  }
 0x4d7   :  { %509 = vadd.xlane.f32.xlu2 %v508_v7 }
 0x524   :  { %v411_v8 = vpop.xlane.xlu1 %410 }
 0x52c   :  { %v315_v9 = vpop.xlane.xlu1 %314 }
 0x52d   :  { %1986 = vrcp.f32 %v315_v9 }
 0x532   :  { %v414_v13 = vpop.xlane.xlu2 %413 }
 0x533   :  { %v1987_v10 = vpop.eup %1986 }
 0x534   :  { %v321_v14 = vmul.f32 %v1987_v10, %v1977_v47 }
 0x536   :  { %1687 = vmatmul.msk.f32.vlgmr.msrb.gmra.mxu1 %vm204_vm5, %v321_v14 }
 0x53a   :  { %v318_v15 = vpop.xlane.xlu2 %317 }
 0x53b   :  { %1988 = vrcp.f32 %v318_v15 }
 0x53c   :  { %1990 = vrcp.f32 %v411_v8 }
 0x541   :  { %v1989_v16 = vpop.eup %1988 }
 0x542   :  { %v507_v17 = vpop.xlane.xlu2 %506  ;;  %v322_v18 = vmul.f32 %v1989_v16, %v1981_v58  ;;  %v1991_v19 = vpop.eup %1990 }
 0x543   :  { %1992 = vrcp.f32 %v507_v17  ;;  %v417_v22 = vmul.f32 %v1991_v19, %v2353_v42 }
 0x544   :  { %v1889_v33 = vpop.permute.xlu1 %1888  ;;  %1688 = vmatmul.msk.f32.gmra.mxu1 %vm204_vm5, %v322_v18  ;;  %1994 = vrcp.f32 %v414_v13 }
 0x545   :  { %v1890_v20 = vunpack.i.l.bf16 %v1889_v33  ;;  %v1891_v21 = vunpack.i.h.bf16 %v1889_v33 }
 0x547   :  { %445 = vmatpush.msrb.mxu0 %v1890_v20 }
 0x549   :  { %446 = vmatpush.msrb.mxu0 %v1891_v21  ;;  %v1993_v23 = vpop.eup %1992  ;;  %v1840_v21 = vld [vmem:[%s2680_s8 + $0x8] sm:$0xff] }
 0x54a   :  { %1693 = vmatmul.msk.f32.vlgmr.msrb.gmra.mxu0 %vm204_vm5, %v417_v22  ;;  %v513_v24 = vmul.f32 %v1993_v23, %v1983_v1  ;;  %v510_v27 = vpop.xlane.xlu2 %509  ;;  %v1995_v28 = vpop.eup %1994 }
 0x54b   :  { %1996 = vrcp.f32 %v510_v27  ;;  %v418_v29 = vmul.f32 %v1995_v28, %v1979_v53  ;;  %714 = vmatpush.bf16.msra.mxu0 %v1840_v21 }
 0x54c   :  { %1699 = vmatmul.msk.f32.vlgmr.msra.gmra.mxu1 %vm204_vm5, %v513_v24  ;;  %1998 = vrcp.f32 %v2094_v5  ;;  %v1839_v24 = vld [vmem:[%s2680_s8] sm:$0xff] }
 0x54f   :  { %715 = vmatpush.bf16.msra.mxu0 %v1839_v24 }
 0x551   :  { %v1997_v30 = vpop.eup %1996 }
 0x552   :  { %1694 = vmatmul.msk.f32.gmra.mxu0 %vm204_vm5, %v418_v29  ;;  %v514_v31 = vmul.f32 %v1997_v30, %v1985_v6  ;;  %v1999_v6 = vpop.eup %1998 }
 0x553   :  { %v630_v7 = vmul.f32 32.0, %v1999_v6  ;;  %vm634_vm7 = vweird.f32 %v1999_v6 }
 0x554   :  { %1700 = vmatmul.msk.f32.gmra.mxu1 %vm204_vm5, %v514_v31 }
 0x555   :  { %v631_v8 = vsub.f32 1.0, %v630_v7 }
 0x557   :  { %v632_v9 = vmul.f32 %v1999_v6, %v631_v8 }
 0x559   :  { %v633_v10 = vadd.f32 %v1999_v6, %v632_v9 }
 0x55b   :  { %v2396_v13 = vsel %vm634_vm7, %v1999_v6, %v633_v10 }
 0x5b3   :  { %v352_v32 = vpop.f32.mrf.mxu1 }
 0x5c1   :  { %v355_v34 = vpop.f32.mrf.mxu1 }
 0x5c2   :  { %v1902_v35 = vpack.i.bf16 %v355_v34, %v352_v32 }
 0x5c4   :  { %1903 = vrot.lane.b32.xlu0 %v1902_v35, %s2703_s4 }
 0x5c7   :  { %v448_v36 = vpop.f32.mrf.mxu0 }
 0x5c9   :  { %v544_v37 = vpop.f32.mrf.mxu1 }
 0x5cf   :  { %v451_v38 = vpop.f32.mrf.mxu0 }
 0x5d0   :  { %v1897_v39 = vpack.i.bf16 %v451_v38, %v448_v36 }
 0x5d1   :  { %v547_v41 = vpop.f32.mrf.mxu1 }
 0x5d2   :  { %1898 = vrot.lane.b32.xlu2 %v1897_v39, %s2702_s26  ;;  %v1907_v42 = vpack.i.bf16 %v547_v41, %v544_v37 }
 0x5d4   :  { %1908 = vrot.lane.b32.xlu0 %v1907_v42, %s2701_s19 }
 0x62c   :  { %v1899_v49 = vpop.permute.xlu2 %1898 }
 0x62d   :  { %v1901_v52 = vunpack.i.h.bf16 %v1899_v49  ;;  %v1900_v53 = vunpack.i.l.bf16 %v1899_v49 }
 0x636   :  { %v1904_v46 = vpop.permute.xlu0 %1903 }
 0x637   :  { %v1906_v47 = vunpack.i.h.bf16 %v1904_v46  ;;  %v1905_v48 = vunpack.i.l.bf16 %v1904_v46  ;;  %v1950_v46 = vld [vmem:[%s2684_s12] ss:$0 sm:$0xff] }
 0x639   :  { %v575_v50 = vsel %vm172_vm4, %v2333_v11, %v1906_v47  ;;  %v574_v51 = vsel %vm172_vm4, %v2335_v12, %v1905_v48  ;;  %v1949_v11 = vld [vmem:[%s2679_s7] ss:$0 sm:$0xff] }
 0x63a   :  { %v576_v57 = vsel %vm204_vm5, %v574_v51, %v1900_v53  ;;  %v577_v58 = vsel %vm204_vm5, %v575_v50, %v1901_v52  ;;  %v1951_v50 = vld [vmem:[%s2685_s13] ss:$0 sm:$0xff] }
 0x646   :  { %v1909_v54 = vpop.permute.xlu0 %1908 }
 0x647   :  { %v1911_v55 = vunpack.i.h.bf16 %v1909_v54  ;;  %v1910_v56 = vunpack.i.l.bf16 %v1909_v54 }
 0x649   :  { %v579_v59 = vsel %vm578_vm6, %v576_v57, %v1910_v56  ;;  %v580_v60 = vsel %vm578_vm6, %v577_v58, %v1911_v55  ;;  %v1844_v57 = vld [vmem:[%s2682_s10 + $0x18] sm:$0xff]  ;;  %v1843_v58 = vld [vmem:[%s2682_s10 + $0x10] sm:$0xff] }
 0x64a   :  { %v581_v61 = vpack.c.bf16 %v580_v60, %v579_v59  ;;  %768 = vmatpush.bf16.msrb.mxu3 %v1844_v57  ;;  %v1842_v59 = vld [vmem:[%s2682_s10 + $0x8] sm:$0xff]  ;;  %v1841_v60 = vld [vmem:[%s2682_s10] sm:$0xff] }
 0x64c   :  { %1709 = vmatmul.msk.bf16.vlgmr.msrb.gmra.mxu2 %vm148_vm3, %v581_v61 }
 0x64e   :  { %769 = vmatpush.bf16.msrb.mxu3 %v1843_v58  ;;  %v1956_v58 = vld [vmem:[%s2677_s5 + $0x1] ss:$0 sm:$0xff]  ;;  %s2718_s5 = smov 112  }
 0x652   :  { %770 = vmatpush.bf16.msrb.mxu3 %v1842_v59 }
 0x656   :  { %771 = vmatpush.bf16.msrb.mxu3 %v1841_v60 }
 0x6cf   :  { %v614_v12 = vpop.f32.mrf.mxu2 }
 0x6d0   :  { %v615_v62 = vadd.f32 %v1949_v11, %v614_v12 }
 0x6d2   :  { %v619_v63 = vadd.f32 %v615_v62, %v2249_v25 }
 0x6d4   :  { %v623_v0 = vsel %vm148_vm3, %v619_v63, 0.0 }
 0x6d5   :  { %624 = vadd.xlane.f32.xlu1 %v623_v0 }
 0x6d7   :  { %v616_v1 = vpop.f32.mrf.mxu2 }
 0x6d8   :  { %v617_v2 = vadd.f32 %v1949_v11, %v616_v1  ;;  %v1952_v11 = vld [vmem:[%s2681_s9] ss:$0 sm:$0xff] }
 0x6da   :  { %v620_v3 = vadd.f32 %v617_v2, %v2251_v26 }
 0x6dc   :  { %v626_v4 = vsel %vm148_vm3, %v620_v3, 0.0 }
 0x6dd   :  { %627 = vadd.xlane.f32.xlu0 %v626_v4 }
 0x748   :  { %v625_v25 = vpop.xlane.xlu1 %624 }
 0x749   :  { %v636_v14 = vmul.f32 %v2396_v13, %v625_v25 }
 0x74b   :  { %v638_v15 = vsub.f32 %v619_v63, %v636_v14 }
 0x74d   :  { %v640_v16 = vmul.f32 %v638_v15, %v638_v15 }
 0x74f   :  { %v642_v26 = vsel %vm148_vm3, %v640_v16, 0.0 }
 0x750   :  { %v628_v17 = vpop.xlane.xlu0 %627  ;;  %643 = vadd.xlane.f32.xlu2 %v642_v26 }
 0x751   :  { %v637_v18 = vmul.f32 %v2396_v13, %v628_v17 }
 0x753   :  { %v639_v33 = vsub.f32 %v620_v3, %v637_v18  ;;  %v1953_v3 = vld [vmem:[%s2683_s11] ss:$0 sm:$0xff] }
 0x755   :  { %v641_v19 = vmul.f32 %v639_v33, %v639_v33 }
 0x757   :  { %v645_v20 = vsel %vm148_vm3, %v641_v19, 0.0 }
 0x758   :  { %646 = vadd.xlane.f32.xlu1 %v645_v20 }
 0x7c3   :  { %v644_v22 = vpop.xlane.xlu2 %643 }
 0x7c4   :  { %v648_v23 = vmul.f32 %v644_v22, %v2396_v13  ;;  %v1846_v22 = vld [vmem:[%s2715_s29 + $0x18] sm:$0xff] }
 0x7c5   :  { %868 = vmatpush.bf16.msrb.mxu1 %v1846_v22 }
 0x7c6   :  { %v650_v27 = vadd.f32 1e-05, %v648_v23 }
 0x7c8   :  { %2000 = vrsqrt.f32 %v650_v27  ;;  %vm658_vm9 = vweird.f32 %v650_v27 }
 0x7cb   :  { %v647_v28 = vpop.xlane.xlu1 %646 }
 0x7cc   :  { %v649_v29 = vmul.f32 %v647_v28, %v2396_v13 }
 0x7ce   :  { %v2001_v30 = vpop.eup %2000  ;;  %v651_v31 = vadd.f32 1e-05, %v649_v29 }
 0x7cf   :  { %v653_v32 = vmul.f32 %v2001_v30, %v650_v27  ;;  %vm659_vm8 = vweird.f32 %v2001_v30  ;;  %v1845_v27 = vld [vmem:[%s2715_s29 + $0x10] sm:$0xff] }
 0x7d0   :  { %2002 = vrsqrt.f32 %v651_v31  ;;  %vm660_vm10 = vmor %vm658_vm9, %vm659_vm8  ;;  %vm668_vm12 = vweird.f32 %v651_v31  ;;  %869 = vmatpush.bf16.msrb.mxu1 %v1845_v27 }
 0x7d1   :  { %v654_v34 = vmul.f32 %v2001_v30, %v653_v32 }
 0x7d3   :  { %v655_v35 = vmul.f32 0.5, %v654_v34 }
 0x7d5   :  { %v656_v36 = vsub.f32 1.5, %v655_v35 }
 0x7d6   :  { %v2003_v37 = vpop.eup %2002 }
 0x7d7   :  { %v657_v38 = vmul.f32 %v2001_v30, %v656_v36  ;;  %v663_v39 = vmul.f32 %v2003_v37, %v651_v31  ;;  %vm669_vm11 = vweird.f32 %v2003_v37 }
 0x7d8   :  { %vm670_vm13 = vmor %vm668_vm12, %vm669_vm11 }
 0x7d9   :  { %v664_v41 = vmul.f32 %v2003_v37, %v663_v39  ;;  %v661_v42 = vsel %vm660_vm10, %v2001_v30, %v657_v38 }
 0x7da   :  { %v672_v47 = vmul.f32 %v661_v42, %v638_v15 }
 0x7db   :  { %v665_v43 = vmul.f32 0.5, %v664_v41 }
 0x7dc   :  { %v677_v51 = vmul.f32 %v1950_v46, %v672_v47  ;;  %v1954_v47 = vld [vmem:[%s2686_s14] ss:$0 sm:$0xff] }
 0x7dd   :  { %v666_v45 = vsub.f32 1.5, %v665_v43 }
 0x7de   :  { %v682_v54 = vadd.f32 %v1951_v50, %v677_v51  ;;  %v1955_v51 = vld [vmem:[%s2687_s15] ss:$0 sm:$0xff] }
 0x7df   :  { %v667_v48 = vmul.f32 %v2003_v37, %v666_v45 }
 0x7e1   :  { %v671_v49 = vsel %vm670_vm13, %v2003_v37, %v667_v48 }
 0x7e2   :  { %v673_v52 = vmul.f32 %v671_v49, %v639_v33 }
 0x7e4   :  { %v678_v53 = vmul.f32 %v1950_v46, %v673_v52 }
 0x7e6   :  { %v683_v55 = vadd.f32 %v1951_v50, %v678_v53 }
 0x7e8   :  { %v684_v56 = vpack.c.bf16 %v683_v55, %v682_v54 }
 0x7ea   :  { %1718 = vmatmul.msk.bf16.vlgmr.msra.gmra.mxu0 %vm148_vm3, %v684_v56 }
 0x867   :  { %v717_v61 = vpop.f32.mrf.mxu0 }
 0x868   :  { %v718_v12 = vadd.f32 %v1952_v11, %v717_v61 }
 0x86a   :  { %v722_v0 = vmax.f32 %v718_v12, 0.0 }
 0x86f   :  { %v719_v62 = vpop.f32.mrf.mxu0 }
 0x870   :  { %v720_v63 = vadd.f32 %v1952_v11, %v719_v62 }
 0x872   :  { %v723_v1 = vmax.f32 %v720_v63, 0.0 }
 0x874   :  { %v724_v2 = vpack.c.bf16 %v723_v1, %v722_v0 }
 0x876   :  { %1735 = vmatmul.msk.bf16.vlgmr.msrb.gmra.mxu3 %vm95_vm0, %v724_v2 }
 0x8f9   :  { %v773_v4 = vpop.f32.mrf.mxu3 }
 0x8fa   :  { %v774_v5 = vadd.f32 %v1953_v3, %v773_v4 }
 0x8fc   :  { %v778_v6 = vadd.f32 %v774_v5, %v682_v54 }
 0x8fe   :  { %v782_v7 = vsel %vm148_vm3, %v778_v6, 0.0 }
 0x8ff   :  { %783 = vadd.xlane.f32.xlu0 %v782_v7 }
 0x901   :  { %v775_v8 = vpop.f32.mrf.mxu3 }
 0x902   :  { %v776_v9 = vadd.f32 %v1953_v3, %v775_v8 }
 0x904   :  { %v779_v10 = vadd.f32 %v776_v9, %v683_v55 }
 0x906   :  { %v785_v25 = vsel %vm148_vm3, %v779_v10, 0.0 }
 0x907   :  { %786 = vadd.xlane.f32.xlu1 %v785_v25 }
 0x972   :  { %v784_v14 = vpop.xlane.xlu0 %783 }
 0x973   :  { %v788_v15 = vmul.f32 %v784_v14, %v2396_v13 }
 0x975   :  { %v790_v16 = vsub.f32 %v778_v6, %v788_v15 }
 0x977   :  { %v792_v26 = vmul.f32 %v790_v16, %v790_v16 }
 0x979   :  { %v794_v17 = vsel %vm148_vm3, %v792_v26, 0.0 }
 0x97a   :  { %v787_v18 = vpop.xlane.xlu1 %786  ;;  %795 = vadd.xlane.f32.xlu0 %v794_v17 }
 0x97b   :  { %v789_v33 = vmul.f32 %v787_v18, %v2396_v13 }
 0x97d   :  { %v791_v19 = vsub.f32 %v779_v10, %v789_v33 }
 0x97f   :  { %v793_v20 = vmul.f32 %v791_v19, %v791_v19 }
 0x981   :  { %v797_v21 = vsel %vm148_vm3, %v793_v20, 0.0 }
 0x982   :  { %798 = vadd.xlane.f32.xlu1 %v797_v21 }
 0x9ed   :  { %v796_v23 = vpop.xlane.xlu0 %795 }
 0x9ee   :  { %v800_v24 = vmul.f32 %v796_v23, %v2396_v13 }
 0x9f0   :  { %v802_v28 = vadd.f32 1e-05, %v800_v24 }
 0x9f2   :  { %2004 = vrsqrt.f32 %v802_v28  ;;  %vm810_vm15 = vweird.f32 %v802_v28 }
 0x9f5   :  { %v799_v29 = vpop.xlane.xlu1 %798 }
 0x9f6   :  { %v801_v30 = vmul.f32 %v799_v29, %v2396_v13 }
 0x9f8   :  { %v2005_v31 = vpop.eup %2004  ;;  %v803_v32 = vadd.f32 1e-05, %v801_v30 }
 0x9f9   :  { %v805_v34 = vmul.f32 %v2005_v31, %v802_v28  ;;  %vm811_vm14 = vweird.f32 %v2005_v31 }
 0x9fa   :  { %2006 = vrsqrt.f32 %v803_v32  ;;  %vm812_vm1 = vmor %vm810_vm15, %vm811_vm14  ;;  %vm820_vm7 = vweird.f32 %v803_v32 }
 0x9fb   :  { %v806_v35 = vmul.f32 %v2005_v31, %v805_v34 }
 0x9fd   :  { %v807_v36 = vmul.f32 0.5, %v806_v35 }
 0x9ff   :  { %v808_v37 = vsub.f32 1.5, %v807_v36 }
 0xa00   :  { %v2007_v38 = vpop.eup %2006 }
 0xa01   :  { %v809_v39 = vmul.f32 %v2005_v31, %v808_v37  ;;  %v815_v41 = vmul.f32 %v2007_v38, %v803_v32  ;;  %vm821_vm2 = vweird.f32 %v2007_v38 }
 0xa02   :  { %vm822_vm8 = vmor %vm820_vm7, %vm821_vm2 }
 0xa03   :  { %v816_v42 = vmul.f32 %v2007_v38, %v815_v41  ;;  %v813_v43 = vsel %vm812_vm1, %v2005_v31, %v809_v39 }
 0xa04   :  { %v824_v48 = vmul.f32 %v813_v43, %v790_v16 }
 0xa05   :  { %v817_v45 = vmul.f32 0.5, %v816_v42 }
 0xa06   :  { %v829_v52 = vmul.f32 %v1954_v47, %v824_v48 }
 0xa07   :  { %v818_v46 = vsub.f32 1.5, %v817_v45 }
 0xa08   :  { %v2456_v55 = vadd.f32 %v1955_v51, %v829_v52 }
 0xa09   :  { %v819_v49 = vmul.f32 %v2007_v38, %v818_v46 }
 0xa0b   :  { %v823_v50 = vsel %vm822_vm8, %v2007_v38, %v819_v49 }
 0xa0c   :  { %v825_v53 = vmul.f32 %v823_v50, %v791_v19 }
 0xa0e   :  { %v830_v54 = vmul.f32 %v1954_v47, %v825_v53 }
 0xa10   :  { %v2458_v56 = vadd.f32 %v1955_v51, %v830_v54 }
 0xa12   :  { %v836_v57 = vpack.c.bf16 %v2458_v56, %v2456_v55 }
 0xa14   :  { %1749 = vmatmul.msk.bf16.vlgmr.msrb.gmra.mxu1 %vm148_vm3, %v836_v57 }
 0xa91   :  { %v871_v59 = vpop.f32.mrf.mxu1 }
 0xa92   :  { %v2466_v60 = vadd.f32 %v1956_v58, %v871_v59 }
 0xa94   :  { %878 = vrot.lane.b32.xlu1 %v2466_v60, %s2081_s3 }
 0xa99   :  { %v873_v61 = vpop.f32.mrf.mxu1 }
 0xa9a   :  { %v2470_v11 = vadd.f32 %v1956_v58, %v873_v61 }
 0xa9c   :  { %976 = vrot.lane.b32.xlu0 %v2470_v11, %s2084_s0  ;;  %880 = vrot.lane.b32.xlu2 %v2470_v11, %s2081_s3  ;;  %s2720_s3 = smov 56  }
 0xa9d   :  { %1070 = vrot.lane.b32.xlu1 %v2466_v60, %s2080_s25 }
 0xaa4   :  { %970 = vrot.lane.b32.xlu2 %v2466_v60, %s2085_s21  ;;  %974 = vrot.lane.b32.xlu0 %v2466_v60, %s2084_s0  ;;  %s2721_s0 = smov 48  }
 0xaa5   :  { %972 = vrot.lane.b32.xlu1 %v2470_v11, %s2085_s21 }
 0xaac   :  { %1168 = vrot.lane.b32.xlu2 %v2470_v11, %s2086_s1  ;;  %1072 = vrot.lane.b32.xlu0 %v2470_v11, %s2080_s25  ;;  %s2719_s25 = smov 64  }
 0xaad   :  { %1162 = vrot.lane.b32.xlu1 %v2466_v60, %s2087_s22 }
 0xab4   :  { %1066 = vrot.lane.b32.xlu2 %v2466_v60, %s2718_s5  ;;  %1166 = vrot.lane.b32.xlu0 %v2466_v60, %s2086_s1  ;;  %s2722_s1 = smov 40  }
 0xabc   :  { %1164 = vrot.lane.b32.xlu2 %v2470_v11, %s2087_s22  ;;  %1068 = vrot.lane.b32.xlu0 %v2470_v11, %s2718_s5  ;;  %s2723_s22 = smov 8  }
 0xaf6   :  { %v881_v12 = vpop.permute.xlu2 %880 }
 0xaf7   :  { %1750 = vmatpush.xpose.msk.msra.mxu2 %vm172_vm4, %v881_v12 }
 0xafe   :  { %v971_v63 = vpop.permute.xlu2 %970 }
 0xb06   :  { %v879_v62 = vpop.permute.xlu1 %878  ;;  %v1169_v3 = vpop.permute.xlu2 %1168 }
 0xb07   :  { %1751 = vmatpush.xpose.msk.msra.mxu2 %vm172_vm4, %v879_v62 }
 0xb0a   :  { %1752 = vmatmul.msk.f32.vlgmr.msra.gmra.mxu2 %vm172_vm4, %v2466_v60 }
 0xb0e   :  { %v977_v0 = vpop.permute.xlu0 %976  ;;  %v1067_v6 = vpop.permute.xlu2 %1066 }
 0xb0f   :  { %1756 = vmatpush.xpose.msk.msra.mxu3 %vm172_vm4, %v977_v0  ;;  %v1071_v1 = vpop.permute.xlu1 %1070 }
 0xb12   :  { %1753 = vmatmul.msk.f32.gmra.mxu2 %vm172_vm4, %v2470_v11 }
 0xb16   :  { %v975_v2 = vpop.permute.xlu0 %974  ;;  %v1165_v10 = vpop.permute.xlu2 %1164 }
 0xb17   :  { %1757 = vmatpush.xpose.msk.msra.mxu3 %vm172_vm4, %v975_v2  ;;  %v973_v5 = vpop.permute.xlu1 %972 }
 0xb1a   :  { %1758 = vmatmul.msk.f32.vlgmr.msra.gmra.mxu3 %vm172_vm4, %v971_v63 }
 0xb1b   :  { %1768 = vmatpush.xpose.msk.msrb.mxu3 %vm172_vm4, %v1169_v3 }
 0xb1e   :  { %v1073_v4 = vpop.permute.xlu0 %1072 }
 0xb1f   :  { %1762 = vmatpush.xpose.msk.msrb.mxu2 %vm172_vm4, %v1073_v4  ;;  %v1163_v8 = vpop.permute.xlu1 %1162 }
 0xb22   :  { %1759 = vmatmul.msk.f32.gmra.mxu3 %vm172_vm4, %v973_v5 }
 0xb23   :  { %1763 = vmatpush.xpose.msk.msrb.mxu2 %vm172_vm4, %v1071_v1 }
 0xb26   :  { %v1167_v7 = vpop.permute.xlu0 %1166  ;;  %1764 = vmatmul.msk.f32.vlgmr.msrb.gmra.mxu2 %vm172_vm4, %v1067_v6 }
 0xb27   :  { %1769 = vmatpush.xpose.msk.msrb.mxu3 %vm172_vm4, %v1167_v7 }
 0xb2a   :  { %1770 = vmatmul.msk.f32.vlgmr.msrb.gmra.mxu3 %vm172_vm4, %v1163_v8 }
 0xb2e   :  { %v1069_v9 = vpop.permute.xlu0 %1068 }
 0xb2f   :  { %1765 = vmatmul.msk.f32.gmra.mxu2 %vm172_vm4, %v1069_v9 }
 0xb32   :  { %1771 = vmatmul.msk.f32.gmra.mxu3 %vm172_vm4, %v1165_v10 }
 0xb8d   :  { %v907_v25 = vpop.f32.mrf.mxu2 }
 0xb8e   :  { %v908_v14 = vadd.f32 %v907_v25, %v2287_v40 }
 0xb90   :  { %v913_v15 = vsel %vm204_vm5, %v908_v14, -inf }
 0xb91   :  { %914 = vmax.xlane.f32.xlu1 %v913_v15 }
 0xb95   :  { %v910_v16 = vpop.f32.mrf.mxu2 }
 0xb96   :  { %v911_v26 = vadd.f32 %v910_v16, %v2294_v44 }
 0xb98   :  { %v916_v17 = vsel %vm204_vm5, %v911_v26, -inf }
 0xb99   :  { %917 = vmax.xlane.f32.xlu2 %v916_v17 }
 0xb9d   :  { %v1003_v18 = vpop.f32.mrf.mxu3 }
 0xb9e   :  { %v1004_v33 = vadd.f32 %v1003_v18, %v2287_v40 }
 0xba0   :  { %v1009_v19 = vsel %vm204_vm5, %v1004_v33, -inf }
 0xba1   :  { %1010 = vmax.xlane.f32.xlu0 %v1009_v19 }
 0xba5   :  { %v1006_v20 = vpop.f32.mrf.mxu3 }
 0xba6   :  { %v1007_v21 = vadd.f32 %v1006_v20, %v2294_v44 }
 0xba8   :  { %v1012_v22 = vsel %vm204_vm5, %v1007_v21, -inf }
 0xba9   :  { %v1099_v23 = vpop.f32.mrf.mxu2  ;;  %1013 = vmax.xlane.f32.xlu1 %v1012_v22 }
 0xbaa   :  { %v1100_v24 = vadd.f32 %v1099_v23, %v2287_v40 }
 0xbac   :  { %v1105_v27 = vsel %vm204_vm5, %v1100_v24, -inf }
 0xbad   :  { %1106 = vmax.xlane.f32.xlu2 %v1105_v27  ;;  %v1195_v28 = vpop.f32.mrf.mxu3 }
 0xbae   :  { %v1196_v29 = vadd.f32 %v1195_v28, %v2287_v40  ;;  %v1912_v40 = vpack.i.bf16 %v2466_v60, %v2470_v11 }
 0xbb0   :  { %v1201_v30 = vsel %vm204_vm5, %v1196_v29, -inf }
 0xbb1   :  { %1202 = vmax.xlane.f32.xlu0 %v1201_v30 }
 0xbb2   :  { %v1102_v31 = vpop.f32.mrf.mxu2 }
 0xbb3   :  { %v1103_v32 = vadd.f32 %v1102_v31, %v2294_v44 }
 0xbb5   :  { %v1198_v34 = vpop.f32.mrf.mxu3  ;;  %v1108_v35 = vsel %vm204_vm5, %v1103_v32, -inf }
 0xbb6   :  { %v2531_v36 = vadd.f32 %v1198_v34, %v2294_v44  ;;  %1109 = vmax.xlane.f32.xlu1 %v1108_v35 }
 0xbb8   :  { %v1204_v37 = vsel %vm204_vm5, %v2531_v36, -inf }
 0xbb9   :  { %1205 = vmax.xlane.f32.xlu2 %v1204_v37 }
 0xbd1   :  { %1913 = vrot.lane.b32.xlu2 %v1912_v40, %s2719_s25 }
 0xc04   :  { %v915_v38 = vpop.xlane.xlu1 %914 }
 0xc05   :  { %v919_v39 = vsub.f32 %v908_v14, %v915_v38 }
 0xc07   :  { %v921_v41 = vmul.f32 1.442695, %v919_v39 }
 0xc09   :  { %2008 = vpow2.f32 %v921_v41 }
 0xc0c   :  { %v918_v42 = vpop.xlane.xlu2 %917 }
 0xc0d   :  { %v920_v43 = vsub.f32 %v911_v26, %v918_v42 }
 0xc0f   :  { %v2009_v45 = vpop.eup %2008  ;;  %v923_v46 = vmul.f32 1.442695, %v920_v43 }
 0xc10   :  { %v925_v44 = vsel %vm204_vm5, %v2009_v45, 0.0 }
 0xc11   :  { %2010 = vpow2.f32 %v923_v46  ;;  %926 = vadd.xlane.f32.xlu0 %v925_v44 }
 0xc14   :  { %v1011_v47 = vpop.xlane.xlu0 %1010 }
 0xc15   :  { %v1015_v48 = vsub.f32 %v1004_v33, %v1011_v47 }
 0xc17   :  { %v2011_v49 = vpop.eup %2010  ;;  %v1017_v50 = vmul.f32 1.442695, %v1015_v48 }
 0xc18   :  { %v928_v51 = vsel %vm204_vm5, %v2011_v49, 0.0 }
 0xc19   :  { %2012 = vpow2.f32 %v1017_v50  ;;  %929 = vadd.xlane.f32.xlu0 %v928_v51 }
 0xc1c   :  { %v1014_v52 = vpop.xlane.xlu1 %1013 }
 0xc1d   :  { %v1016_v53 = vsub.f32 %v1007_v21, %v1014_v52 }
 0xc1f   :  { %v2540_v54 = vpop.eup %2012  ;;  %v1019_v57 = vmul.f32 1.442695, %v1016_v53 }
 0xc20   :  { %v1107_v58 = vpop.xlane.xlu2 %1106  ;;  %v1021_v59 = vsel %vm204_vm5, %v2540_v54, 0.0 }
 0xc21   :  { %2014 = vpow2.f32 %v1019_v57  ;;  %v1111_v60 = vsub.f32 %v1100_v24, %v1107_v58  ;;  %1022 = vadd.xlane.f32.xlu1 %v1021_v59 }
 0xc23   :  { %v1113_v61 = vmul.f32 1.442695, %v1111_v60 }
 0xc24   :  { %v1203_v11 = vpop.xlane.xlu0 %1202 }
 0xc25   :  { %v1207_v12 = vsub.f32 %v1196_v29, %v1203_v11  ;;  %2016 = vpow2.f32 %v1113_v61 }
 0xc27   :  { %v2544_v62 = vpop.eup %2014  ;;  %v1209_v63 = vmul.f32 1.442695, %v1207_v12 }
 0xc28   :  { %v1024_v0 = vsel %vm204_vm5, %v2544_v62, 0.0 }
 0xc29   :  { %2018 = vpow2.f32 %v1209_v63  ;;  %1025 = vadd.xlane.f32.xlu0 %v1024_v0  ;;  %v1110_v9 = vpop.xlane.xlu1 %1109 }
 0xc2a   :  { %v1112_v10 = vsub.f32 %v1103_v32, %v1110_v9 }
 0xc2b   :  { %v2017_v2 = vpop.eup %2016 }
 0xc2c   :  { %v1206_v1 = vpop.xlane.xlu2 %1205  ;;  %v1117_v5 = vsel %vm204_vm5, %v2017_v2, 0.0  ;;  %v1115_v25 = vmul.f32 1.442695, %v1112_v10 }
 0xc2d   :  { %v1208_v16 = vsub.f32 %v2531_v36, %v1206_v1  ;;  %v1848_v1 = vld [vmem:[%s2678_s6 + $0x18] sm:$0xff] }
 0xc2e   :  { %2020 = vpow2.f32 %v1115_v25  ;;  %1320 = vmatpush.bf16.msra.mxu2 %v1848_v1 }
 0xc2f   :  { %v2548_v3 = vpop.eup %2018  ;;  %v1211_v26 = vmul.f32 1.442695, %v1208_v16 }
 0xc30   :  { %v1213_v4 = vsel %vm204_vm5, %v2548_v3, 0.0 }
 0xc31   :  { %1214 = vadd.xlane.f32.xlu2 %v1213_v4  ;;  %1118 = vadd.xlane.f32.xlu0 %v1117_v5  ;;  %2022 = vpow2.f32 %v1211_v26 }
 0xc34   :  { %v1914_v6 = vpop.permute.xlu2 %1913  ;;  %v2021_v14 = vpop.eup %2020 }
 0xc35   :  { %v1915_v7 = vunpack.i.l.bf16 %v1914_v6  ;;  %v1916_v8 = vunpack.i.h.bf16 %v1914_v6  ;;  %v1120_v15 = vsel %vm204_vm5, %v2021_v14, 0.0 }
 0xc37   :  { %961 = vmatpush.msrb.mxu0 %v1915_v7  ;;  %v2023_v17 = vpop.eup %2022 }
 0xc38   :  { %v1216_v18 = vsel %vm204_vm5, %v2023_v17, 0.0 }
 0xc39   :  { %962 = vmatpush.msrb.mxu0 %v1916_v8 }
 0xc3a   :  { %1918 = vrot.lane.b32.xlu1 %v1912_v40, %s2720_s3  ;;  %s1652_s3 = sshll.u32 %s2692_s20, 4  ;;  %s1653_s3 = int_to_ptr.hbm [resolvable:$true] %s1652_s3 }
 0xc45   :  { %1923 = vrot.lane.b32.xlu0 %v1912_v40, %s2721_s0 }
 0xc4d   :  { %1928 = vrot.lane.b32.xlu0 %v1912_v40, %s2722_s1 }
 0xc64   :  { %1121 = vadd.xlane.f32.xlu1 %v1120_v15 }
 0xc77   :  { %1217 = vadd.xlane.f32.xlu0 %v1216_v18 }
 0xc84   :  { %v927_v33 = vpop.xlane.xlu0 %926 }
 0xc85   :  { %2024 = vrcp.f32 %v927_v33 }
 0xc8b   :  { %v2025_v19 = vpop.eup %2024 }
 0xc8c   :  { %v933_v20 = vmul.f32 %v2025_v19, %v2009_v45  ;;  %v930_v21 = vpop.xlane.xlu0 %929  ;;  %v1957_v19 = vld [vmem:[%s2679_s7 + $0x1] ss:$0 sm:$0xff] }
 0xc8d   :  { %2026 = vrcp.f32 %v930_v21 }
 0xc8e   :  { %1754 = vmatmul.msk.f32.vlgmr.msrb.gmra.mxu0 %vm204_vm5, %v933_v20 }
 0xc93   :  { %v2027_v22 = vpop.eup %2026 }
 0xc94   :  { %v934_v23 = vmul.f32 %v2027_v22, %v2011_v49  ;;  %v1023_v24 = vpop.xlane.xlu1 %1022 }
 0xc95   :  { %2028 = vrcp.f32 %v1023_v24 }
 0xc96   :  { %1755 = vmatmul.msk.f32.gmra.mxu0 %vm204_vm5, %v934_v23 }
 0xc9b   :  { %v2029_v29 = vpop.eup %2028 }
 0xc9c   :  { %v1026_v27 = vpop.xlane.xlu0 %1025  ;;  %v1029_v34 = vmul.f32 %v2029_v29, %v2540_v54 }
 0xc9d   :  { %2030 = vrcp.f32 %v1026_v27 }
 0xca3   :  { %v2031_v35 = vpop.eup %2030 }
 0xca4   :  { %v1119_v31 = vpop.xlane.xlu0 %1118  ;;  %v1215_v36 = vpop.xlane.xlu2 %1214  ;;  %v1030_v39 = vmul.f32 %v2031_v35, %v2544_v62 }
 0xca5   :  { %2032 = vrcp.f32 %v1119_v31 }
 0xca6   :  { %2034 = vrcp.f32 %v1215_v36 }
 0xcab   :  { %v2033_v40 = vpop.eup %2032 }
 0xcac   :  { %v1919_v28 = vpop.permute.xlu1 %1918  ;;  %v1125_v42 = vmul.f32 %v2033_v40, %v2017_v2  ;;  %v2035_v45 = vpop.eup %2034  ;;  %v1847_v2 = vld [vmem:[%s2678_s6 + $0x10] sm:$0xff] }
 0xcad   :  { %v1920_v30 = vunpack.i.l.bf16 %v1919_v28  ;;  %v1921_v32 = vunpack.i.h.bf16 %v1919_v28  ;;  %v1221_v47 = vmul.f32 %v2035_v45, %v2548_v3  ;;  %1321 = vmatpush.bf16.msra.mxu2 %v1847_v2 }
 0xcaf   :  { %1057 = vmatpush.msra.mxu1 %v1920_v30 }
 0xcb1   :  { %1058 = vmatpush.msra.mxu1 %v1921_v32 }
 0xcb2   :  { %1760 = vmatmul.msk.f32.vlgmr.msra.gmra.mxu1 %vm204_vm5, %v1029_v34 }
 0xcb7   :  { %v1924_v37 = vpop.permute.xlu0 %1923 }
 0xcb8   :  { %v1925_v38 = vunpack.i.l.bf16 %v1924_v37  ;;  %v1926_v41 = vunpack.i.h.bf16 %v1924_v37 }
 0xcba   :  { %1761 = vmatmul.msk.f32.gmra.mxu1 %vm204_vm5, %v1030_v39  ;;  %1153 = vmatpush.msra.mxu0 %v1925_v38 }
 0xcbc   :  { %1154 = vmatpush.msra.mxu0 %v1926_v41 }
 0xcbd   :  { %1766 = vmatmul.msk.f32.vlgmr.msra.gmra.mxu0 %vm204_vm5, %v1125_v42 }
 0xcbf   :  { %v1929_v43 = vpop.permute.xlu0 %1928 }
 0xcc0   :  { %v1930_v46 = vunpack.i.l.bf16 %v1929_v43  ;;  %v1931_v44 = vunpack.i.h.bf16 %v1929_v43  ;;  %v1849_v43 = vld [vmem:[%s2680_s8 + $0x10] sm:$0xff] }
 0xcc2   :  { %1249 = vmatpush.msrb.mxu1 %v1930_v46 }
 0xcc4   :  { %1250 = vmatpush.msrb.mxu1 %v1931_v44 }
 0xcc5   :  { %1772 = vmatmul.msk.f32.vlgmr.msrb.gmra.mxu1 %vm204_vm5, %v1221_v47 }
 0xcd7   :  { %v1122_v48 = vpop.xlane.xlu1 %1121 }
 0xcd8   :  { %2036 = vrcp.f32 %v1122_v48 }
 0xcde   :  { %v2037_v49 = vpop.eup %2036 }
 0xcdf   :  { %v1126_v50 = vmul.f32 %v2037_v49, %v2021_v14 }
 0xce1   :  { %1767 = vmatmul.msk.f32.gmra.mxu0 %vm204_vm5, %v1126_v50 }
 0xcea   :  { %v1218_v51 = vpop.xlane.xlu0 %1217 }
 0xceb   :  { %2038 = vrcp.f32 %v1218_v51 }
 0xcf1   :  { %v2039_v52 = vpop.eup %2038 }
 0xcf2   :  { %v1222_v53 = vmul.f32 %v2039_v52, %v2023_v17 }
 0xcf4   :  { %1773 = vmatmul.msk.f32.gmra.mxu1 %vm204_vm5, %v1222_v53 }
 0xd0b   :  { %v964_v59 = vpop.f32.mrf.mxu0 }
 0xd13   :  { %v967_v60 = vpop.f32.mrf.mxu0 }
 0xd2f   :  { %v1060_v54 = vpop.f32.mrf.mxu1 }
 0xd37   :  { %v1063_v57 = vpop.f32.mrf.mxu1 }
 0xd38   :  { %v1932_v58 = vpack.i.bf16 %v1063_v57, %v1060_v54 }
 0xd3a   :  { %1933 = vrot.lane.b32.xlu2 %v1932_v58, %s2723_s22  ;;  %v1156_v61 = vpop.f32.mrf.mxu0 }
 0xd42   :  { %v1252_v62 = vpop.f32.mrf.mxu1 }
 0xd5e   :  { %v1159_v11 = vpop.f32.mrf.mxu0 }
 0xd5f   :  { %v1937_v12 = vpack.i.bf16 %v1159_v11, %v1156_v61  ;;  %v1958_v61 = vld [vmem:[%s2684_s12 + $0x1] ss:$0 sm:$0xff] }
 0xd61   :  { %1938 = vrot.lane.b32.xlu1 %v1937_v12, %s2724_s27 }
 0xd71   :  { %v1255_v63 = vpop.f32.mrf.mxu1 }
 0xd72   :  { %v1942_v0 = vpack.i.bf16 %v1255_v63, %v1252_v62  ;;  %v1959_v63 = vld [vmem:[%s2685_s13 + $0x1] ss:$0 sm:$0xff] }
 0xd74   :  { %1943 = vrot.lane.b32.xlu2 %v1942_v0, %s2725_s28 }
 0xd94   :  { %v1934_v3 = vpop.permute.xlu2 %1933 }
 0xd95   :  { %v1936_v4 = vunpack.i.h.bf16 %v1934_v3  ;;  %v1935_v5 = vunpack.i.l.bf16 %v1934_v3 }
 0xd97   :  { %v1283_v10 = vsel %vm172_vm4, %v967_v60, %v1936_v4  ;;  %v1282_v25 = vsel %vm172_vm4, %v964_v59, %v1935_v5 }
 0xdce   :  { %v1944_v6 = vpop.permute.xlu2 %1943 }
 0xdcf   :  { %v1946_v14 = vunpack.i.h.bf16 %v1944_v6  ;;  %v1945_v15 = vunpack.i.l.bf16 %v1944_v6  ;;  %v1854_v6 = vld [vmem:[%s2682_s10 + $0x38] sm:$0xff] }
 0xdd0   :  { %1476 = vmatpush.bf16.msra.mxu3 %v1854_v6 }
 0xdd3   :  { %v1939_v7 = vpop.permute.xlu1 %1938 }
 0xdd4   :  { %v1941_v8 = vunpack.i.h.bf16 %v1939_v7  ;;  %v1940_v9 = vunpack.i.l.bf16 %v1939_v7  ;;  %v1853_v7 = vld [vmem:[%s2682_s10 + $0x30] sm:$0xff] }
 0xdd5   :  { %1477 = vmatpush.bf16.msra.mxu3 %v1853_v7 }
 0xdd6   :  { %v1284_v16 = vsel %vm204_vm5, %v1282_v25, %v1940_v9  ;;  %v1285_v26 = vsel %vm204_vm5, %v1283_v10, %v1941_v8  ;;  %v1852_v8 = vld [vmem:[%s2682_s10 + $0x28] sm:$0xff]  ;;  %v1851_v9 = vld [vmem:[%s2682_s10 + $0x20] sm:$0xff] }
 0xdd7   :  { %v1286_v17 = vsel %vm578_vm6, %v1284_v16, %v1945_v15  ;;  %v1287_v18 = vsel %vm578_vm6, %v1285_v26, %v1946_v14  ;;  %v1960_v25 = vld [vmem:[%s2681_s9 + $0x1] ss:$0 sm:$0xff] }
 0xdd8   :  { %v1288_v33 = vpack.c.bf16 %v1287_v18, %v1286_v17 }
 0xdd9   :  { %1478 = vmatpush.bf16.msra.mxu3 %v1852_v8 }
 0xdda   :  { %1787 = vmatmul.msk.bf16.vlgmr.msra.gmra.mxu2 %vm148_vm3, %v1288_v33 }
 0xddd   :  { %1479 = vmatpush.bf16.msra.mxu3 %v1851_v9 }
 0xe5d   :  { %v1323_v20 = vpop.f32.mrf.mxu2 }
 0xe5e   :  { %v1324_v21 = vadd.f32 %v1957_v19, %v1323_v20 }
 0xe60   :  { %v1328_v22 = vadd.f32 %v1324_v21, %v2456_v55 }
 0xe62   :  { %v1334_v23 = vsel %vm148_vm3, %v1328_v22, 0.0 }
 0xe63   :  { %1335 = vadd.xlane.f32.xlu0 %v1334_v23 }
 0xe65   :  { %v1325_v24 = vpop.f32.mrf.mxu2 }
 0xe66   :  { %v1326_v27 = vadd.f32 %v1957_v19, %v1325_v24  ;;  %v1961_v19 = vld [vmem:[%s2683_s11 + $0x1] ss:$0 sm:$0xff] }
 0xe68   :  { %v1329_v28 = vadd.f32 %v1326_v27, %v2458_v56  ;;  %v1850_v56 = vld [vmem:[%s2680_s8 + $0x18] sm:$0xff] }
 0xe69   :  { %1420 = vmatpush.bf16.msrb.mxu0 %v1850_v56 }
 0xe6a   :  { %v1337_v29 = vsel %vm148_vm3, %v1329_v28, 0.0 }
 0xe6b   :  { %1338 = vadd.xlane.f32.xlu2 %v1337_v29 }
 0xe6d   :  { %1421 = vmatpush.bf16.msrb.mxu0 %v1849_v43 }
 0xed6   :  { %v1336_v30 = vpop.xlane.xlu0 %1335 }
 0xed7   :  { %v1340_v31 = vmul.f32 %v1336_v30, %v2396_v13 }
 0xed9   :  { %v1342_v32 = vsub.f32 %v1328_v22, %v1340_v31 }
 0xedb   :  { %v1344_v34 = vmul.f32 %v1342_v32, %v1342_v32 }
 0xedd   :  { %v1346_v35 = vsel %vm148_vm3, %v1344_v34, 0.0 }
 0xede   :  { %v1339_v36 = vpop.xlane.xlu2 %1338  ;;  %1347 = vadd.xlane.f32.xlu1 %v1346_v35 }
 0xedf   :  { %v1341_v55 = vmul.f32 %v1339_v36, %v2396_v13 }
 0xee1   :  { %v1343_v37 = vsub.f32 %v1329_v28, %v1341_v55 }
 0xee3   :  { %v1345_v40 = vmul.f32 %v1343_v37, %v1343_v37 }
 0xee5   :  { %v1349_v38 = vsel %vm148_vm3, %v1345_v40, 0.0 }
 0xee6   :  { %1350 = vadd.xlane.f32.xlu0 %v1349_v38 }
 0xf51   :  { %v1348_v39 = vpop.xlane.xlu1 %1347 }
 0xf52   :  { %v1352_v41 = vmul.f32 %v1348_v39, %v2396_v13 }
 0xf54   :  { %v1354_v42 = vadd.f32 1e-05, %v1352_v41 }
 0xf56   :  { %2040 = vrsqrt.f32 %v1354_v42  ;;  %vm1362_vm6 = vweird.f32 %v1354_v42 }
 0xf59   :  { %v1351_v45 = vpop.xlane.xlu0 %1350 }
 0xf5a   :  { %v1353_v46 = vmul.f32 %v1351_v45, %v2396_v13 }
 0xf5c   :  { %v2041_v44 = vpop.eup %2040  ;;  %v1355_v47 = vadd.f32 1e-05, %v1353_v46 }
 0xf5d   :  { %v1357_v48 = vmul.f32 %v2041_v44, %v1354_v42  ;;  %vm1363_vm5 = vweird.f32 %v2041_v44 }
 0xf5e   :  { %2042 = vrsqrt.f32 %v1355_v47  ;;  %vm1364_vm9 = vmor %vm1362_vm6, %vm1363_vm5  ;;  %vm1372_vm11 = vweird.f32 %v1355_v47 }
 0xf5f   :  { %v1358_v49 = vmul.f32 %v2041_v44, %v1357_v48 }
 0xf61   :  { %v1359_v50 = vmul.f32 0.5, %v1358_v49 }
 0xf63   :  { %v1360_v51 = vsub.f32 1.5, %v1359_v50 }
 0xf64   :  { %v2043_v52 = vpop.eup %2042 }
 0xf65   :  { %v1361_v53 = vmul.f32 %v2041_v44, %v1360_v51  ;;  %v1367_v54 = vmul.f32 %v2043_v52, %v1355_v47  ;;  %vm1373_vm10 = vweird.f32 %v2043_v52 }
 0xf66   :  { %vm1374_vm12 = vmor %vm1372_vm11, %vm1373_vm10 }
 0xf67   :  { %v1368_v57 = vmul.f32 %v2043_v52, %v1367_v54  ;;  %v1365_v58 = vsel %vm1364_vm9, %v2041_v44, %v1361_v53 }
 0xf68   :  { %v1376_v11 = vmul.f32 %v1365_v58, %v1342_v32  ;;  %v1963_v58 = vld [vmem:[%s2687_s15 + $0x1] ss:$0 sm:$0xff] }
 0xf69   :  { %v1369_v59 = vmul.f32 0.5, %v1368_v57 }
 0xf6a   :  { %v1381_v0 = vmul.f32 %v1958_v61, %v1376_v11 }
 0xf6b   :  { %v1370_v60 = vsub.f32 1.5, %v1369_v59 }
 0xf6c   :  { %v1386_v3 = vadd.f32 %v1959_v63, %v1381_v0 }
 0xf6d   :  { %v1371_v12 = vmul.f32 %v2043_v52, %v1370_v60 }
 0xf6f   :  { %v1375_v62 = vsel %vm1374_vm12, %v2043_v52, %v1371_v12  ;;  %v1962_v52 = vld [vmem:[%s2686_s14 + $0x1] ss:$0 sm:$0xff] }
 0xf70   :  { %v1377_v1 = vmul.f32 %v1375_v62, %v1343_v37 }
 0xf72   :  { %v1382_v2 = vmul.f32 %v1958_v61, %v1377_v1 }
 0xf74   :  { %v1387_v4 = vadd.f32 %v1959_v63, %v1382_v2 }
 0xf76   :  { %v1388_v5 = vpack.c.bf16 %v1387_v4, %v1386_v3 }
 0xf78   :  { %1803 = vmatmul.msk.bf16.vlgmr.msrb.gmra.mxu0 %vm148_vm3, %v1388_v5 }
 0xff5   :  { %v1423_v10 = vpop.f32.mrf.mxu0 }
 0xff6   :  { %v1424_v14 = vadd.f32 %v1960_v25, %v1423_v10 }
 0xff8   :  { %v1428_v26 = vmax.f32 %v1424_v14, 0.0 }
 0xffd   :  { %v1425_v15 = vpop.f32.mrf.mxu0 }
 0xffe   :  { %v1426_v16 = vadd.f32 %v1960_v25, %v1425_v15 }
0x1000   :  { %v1429_v17 = vmax.f32 %v1426_v16, 0.0 }
0x1002   :  { %v1430_v18 = vpack.c.bf16 %v1429_v17, %v1428_v26 }
0x1004   :  { %1829 = vmatmul.msk.bf16.vlgmr.msra.gmra.mxu3 %vm95_vm0, %v1430_v18 }
0x1087   :  { %v1481_v33 = vpop.f32.mrf.mxu3 }
0x1088   :  { %v1482_v23 = vadd.f32 %v1961_v19, %v1481_v33  ;;  %v1603_v33 = vld [vmem:[#allocation2] sm:$0x1] }
0x108a   :  { %v1486_v27 = vadd.f32 %v1482_v23, %v1386_v3 }
0x108c   :  { %v1492_v28 = vsel %vm148_vm3, %v1486_v27, 0.0 }
0x108f   :  { %v1483_v20 = vpop.f32.mrf.mxu3 }
0x1090   :  { %v1484_v21 = vadd.f32 %v1961_v19, %v1483_v20 }
0x1092   :  { %v1487_v22 = vadd.f32 %v1484_v21, %v1387_v4 }
0x1094   :  { %v1495_v24 = vsel %vm148_vm3, %v1487_v22, 0.0 }
0x1095   :  { %1496 = vadd.xlane.f32.xlu0 %v1495_v24 }
0x109d   :  { %1493 = vadd.xlane.f32.xlu0 %v1492_v28 }
0x1108   :  { %v1497_v29 = vpop.xlane.xlu0 %1496 }
0x1109   :  { %v1499_v30 = vmul.f32 %v1497_v29, %v2396_v13 }
0x110b   :  { %v1501_v31 = vsub.f32 %v1487_v22, %v1499_v30 }
0x110d   :  { %v1503_v32 = vmul.f32 %v1501_v31, %v1501_v31 }
0x110f   :  { %v1507_v34 = vsel %vm148_vm3, %v1503_v32, 0.0 }
0x1110   :  { %1508 = vadd.xlane.f32.xlu0 %v1507_v34  ;;  %v1494_v35 = vpop.xlane.xlu0 %1493 }
0x1111   :  { %v1498_v36 = vmul.f32 %v1494_v35, %v2396_v13  ;;  %v1965_v35 = vld [vmem:[%s2689_s17] ss:$0 sm:$0xff]  ;;  %s2095_s17 = smov [#allocation3]  }
0x1112   :  { %s1650_s8 = sshll.u32 %s2095_s17, 4  ;;  %s1651_s8 = int_to_ptr.vmem [resolvable:$true] %s1650_s8 }
0x1113   :  { %v1500_v55 = vsub.f32 %v1486_v27, %v1498_v36 }
0x1115   :  { %v1502_v37 = vmul.f32 %v1500_v55, %v1500_v55 }
0x1117   :  { %v1504_v40 = vsel %vm148_vm3, %v1502_v37, 0.0 }
0x1118   :  { %1505 = vadd.xlane.f32.xlu0 %v1504_v40 }
0x1183   :  { %v1509_v38 = vpop.xlane.xlu0 %1508 }
0x1184   :  { %v1511_v56 = vmul.f32 %v1509_v38, %v2396_v13 }
0x1186   :  { %v1513_v39 = vadd.f32 1e-05, %v1511_v56 }
0x1188   :  { %2044 = vrsqrt.f32 %v1513_v39  ;;  %vm1530_vm13 = vweird.f32 %v1513_v39 }
0x118b   :  { %v1506_v41 = vpop.xlane.xlu0 %1505 }
0x118c   :  { %v1510_v42 = vmul.f32 %v1506_v41, %v2396_v13 }
0x118e   :  { %v2045_v43 = vpop.eup %2044  ;;  %v1512_v45 = vadd.f32 1e-05, %v1510_v42 }
0x118f   :  { %v1525_v46 = vmul.f32 %v2045_v43, %v1513_v39  ;;  %vm1531_vm0 = vweird.f32 %v2045_v43 }
0x1190   :  { %2046 = vrsqrt.f32 %v1512_v45  ;;  %vm1532_vm14 = vmor %vm1530_vm13, %vm1531_vm0  ;;  %vm1520_vm1 = vweird.f32 %v1512_v45 }
0x1191   :  { %v1526_v44 = vmul.f32 %v2045_v43, %v1525_v46 }
0x1193   :  { %v1527_v47 = vmul.f32 0.5, %v1526_v44 }
0x1195   :  { %v1528_v48 = vsub.f32 1.5, %v1527_v47 }
0x1196   :  { %v2047_v49 = vpop.eup %2046 }
0x1197   :  { %v1529_v50 = vmul.f32 %v2045_v43, %v1528_v48  ;;  %v1515_v51 = vmul.f32 %v2047_v49, %v1512_v45  ;;  %vm1521_vm15 = vweird.f32 %v2047_v49 }
0x1198   :  { %vm1522_vm2 = vmor %vm1520_vm1, %vm1521_vm15 }
0x1199   :  { %v1516_v53 = vmul.f32 %v2047_v49, %v1515_v51  ;;  %v1533_v54 = vsel %vm1532_vm14, %v2045_v43, %v1529_v50  ;;  %v1602_v43 = vld [vmem:[%s2690_s18] sm:$0x1]  ;;  %s2096_s18 = smov 128  }
0x119a   :  { %v1535_v57 = vmul.f32 %v1533_v54, %v1501_v31  ;;  %v1964_v31 = vld [vmem:[%s2688_s16] ss:$0 sm:$0xff] }
0x119b   :  { %v1517_v59 = vmul.f32 0.5, %v1516_v53 }
0x119c   :  { %v1540_v60 = vmul.f32 %v1962_v52, %v1535_v57 }
0x119d   :  { %v1518_v61 = vsub.f32 1.5, %v1517_v59 }
0x119e   :  { %v1545_v11 = vadd.f32 %v1963_v58, %v1540_v60 }
0x119f   :  { %v1519_v12 = vmul.f32 %v2047_v49, %v1518_v61 }
0x11a0   :  { %v1551_v62 = vsel %vm148_vm3, %v1545_v11, 0.0 }
0x11a1   :  { %1552 = vadd.xlane.f32.xlu2 %v1551_v62  ;;  %v1523_v63 = vsel %vm1522_vm2, %v2047_v49, %v1519_v12 }
0x11a2   :  { %v1534_v0 = vmul.f32 %v1523_v63, %v1500_v55 }
0x11a4   :  { %v1539_v1 = vmul.f32 %v1962_v52, %v1534_v0 }
0x11a6   :  { %v1544_v2 = vadd.f32 %v1963_v58, %v1539_v1 }
0x11a8   :  { %v1548_v3 = vsel %vm148_vm3, %v1544_v2, 0.0 }
0x11a9   :  { %1549 = vadd.xlane.f32.xlu1 %v1548_v3 }
0x11c2   :  { %1606 = vperm.xlu1 %1947, %v1603_v33  }
0x1214   :  { %v1553_v4 = vpop.xlane.xlu2 %1552 }
0x1215   :  { %v1555_v5 = vmul.f32 %v1553_v4, %v2396_v13 }
0x1217   :  { %v1557_v6 = vsub.f32 %v1545_v11, %v1555_v5 }
0x1219   :  { %v1559_v7 = vmul.f32 %v1557_v6, %v1557_v6 }
0x121b   :  { %v1563_v8 = vsel %vm148_vm3, %v1559_v7, 0.0 }
0x121c   :  { %1564 = vadd.xlane.f32.xlu0 %v1563_v8  ;;  %v1550_v9 = vpop.xlane.xlu1 %1549 }
0x121d   :  { %v1554_v10 = vmul.f32 %v1550_v9, %v2396_v13 }
0x121f   :  { %v1556_v25 = vsub.f32 %v1544_v2, %v1554_v10 }
0x1221   :  { %v1558_v14 = vmul.f32 %v1556_v25, %v1556_v25 }
0x1223   :  { %v1560_v15 = vsel %vm148_vm3, %v1558_v14, 0.0 }
0x1224   :  { %1561 = vadd.xlane.f32.xlu2 %v1560_v15 }
0x1234   :  { %v1607_v45 = vpop.permute.xlu1 %1606 }
0x1235   :  { %v1609_v46 = vperm.slane %v1607_v45, 0 }
0x128f   :  { %v1565_v16 = vpop.xlane.xlu0 %1564 }
0x1290   :  { %v1567_v26 = vmul.f32 %v1565_v16, %v2396_v13 }
0x1292   :  { %v1569_v17 = vadd.f32 1e-05, %v1567_v26 }
0x1294   :  { %2048 = vrsqrt.f32 %v1569_v17  ;;  %vm1586_vm8 = vweird.f32 %v1569_v17 }
0x1297   :  { %v1562_v18 = vpop.xlane.xlu2 %1561 }
0x1298   :  { %v1566_v19 = vmul.f32 %v1562_v18, %v2396_v13 }
0x129a   :  { %v2049_v20 = vpop.eup %2048  ;;  %v1568_v21 = vadd.f32 1e-05, %v1566_v19 }
0x129b   :  { %v1581_v22 = vmul.f32 %v2049_v20, %v1569_v17  ;;  %vm1587_vm7 = vweird.f32 %v2049_v20 }
0x129c   :  { %2050 = vrsqrt.f32 %v1568_v21  ;;  %vm1588_vm5 = vmor %vm1586_vm8, %vm1587_vm7  ;;  %vm1576_vm9 = vweird.f32 %v1568_v21 }
0x129d   :  { %v1582_v23 = vmul.f32 %v2049_v20, %v1581_v22 }
0x129f   :  { %v1583_v24 = vmul.f32 0.5, %v1582_v23 }
0x12a1   :  { %v1584_v27 = vsub.f32 1.5, %v1583_v24 }
0x12a2   :  { %v2051_v28 = vpop.eup %2050 }
0x12a3   :  { %v1585_v29 = vmul.f32 %v2049_v20, %v1584_v27  ;;  %v1571_v30 = vmul.f32 %v2051_v28, %v1568_v21  ;;  %vm1577_vm6 = vweird.f32 %v2051_v28 }
0x12a4   :  { %vm1578_vm10 = vmor %vm1576_vm9, %vm1577_vm6 }
0x12a5   :  { %v1589_v32 = vsel %vm1588_vm5, %v2049_v20, %v1585_v29  ;;  %v1572_v13 = vmul.f32 %v2051_v28, %v1571_v30 }
0x12a6   :  { %v1591_v34 = vmul.f32 %v1589_v32, %v1557_v6 }
0x12a7   :  { %v1573_v36 = vmul.f32 0.5, %v1572_v13 }
0x12a8   :  { %v1596_v55 = vmul.f32 %v1964_v31, %v1591_v34 }
0x12a9   :  { %v1574_v37 = vsub.f32 1.5, %v1573_v36 }
0x12aa   :  { %v1601_v40 = vadd.f32 %v1965_v35, %v1596_v55 }
0x12ab   :  { %v1575_v38 = vmul.f32 %v2051_v28, %v1574_v37 }
0x12ac   :  { %1832 = vmatpush.xpose.msk.msra.mxu1 %vm148_vm3, %v1601_v40 }
0x12ad   :  { %v1579_v56 = vsel %vm1578_vm10, %v2051_v28, %v1575_v38 }
0x12ae   :  { %v1590_v39 = vmul.f32 %v1579_v56, %v1556_v25 }
0x12b0   :  { %v1595_v41 = vmul.f32 %v1964_v31, %v1590_v39 }
0x12b2   :  { %v1600_v42 = vadd.f32 %v1965_v35, %v1595_v41 }
0x12b4   :  { %1833 = vmatpush.xpose.msk.msra.mxu1 %vm148_vm3, %v1600_v42 }
0x12b7   :  { %1834 = vmatmul.msk.f32.vlgmr.msra.gmra.mxu1 %vm148_vm3, %v1602_v43 }
0x1334   :  { %v1636_v44 = vpop.f32.mrf.mxu1 }
0x1335   :  { %v1637_v47 = vadd.f32 %v1636_v44, %v1609_v46 }
0x1337   :  { %v1639_v48 = vperm.slane %v1637_v47, 0 }
0x1339   :  { %1644 = vst.msk [vmem:[#allocation3] sm:$0xff] %vm172_vm4, %v1639_v48  ;;  %1641 = vrot.lane.b32.xlu0 %v1639_v48, %s2085_s21 }
0x13ab   :  { %v1642_v49 = vpop.permute.xlu0 %1641 }
0x13ac   :  { %1645 = vst.msk [vmem:[#allocation3 + $0x8] sm:$0xff] %vm172_vm4, %v1642_v49 }
0x13ad   :  { %1658 = dma.vmem_to_hbm [thread:$0]  %s1651_s8, 256, %s1653_s3, [#allocation4], %s2096_s18, %s2096_s18, %s2723_s22  }
0x13ae   :  { %2076 = dma.done.wait [#allocation4], 256  }
0x13af   :  { %2077 = vsyncadd [#allocation4], 4294967040 }
0x13b0   :  { %1663 = vsyncpa [#allocation4], 1 }

</bundles_post_ra>
